<compile_context>
chip_gen: v5e
topology: v5e:2x2
jax: 0.10.0
libtpu: 0.0.40
codegen_flags: <defaults>
</compile_context>

<pallas_src>
import functools

import jax
import jax.numpy as jnp
from jax.experimental import pallas as pl
from jax.experimental.pallas import tpu as pltpu


def _warmup_kernel(x_ref, p_ref, out_ref, *, n, c_in, c_out, h, w, count, eps):
    # x_ref:   (N, C_in, H, W)       f32 VMEM   input activations
    # p_ref:   (C_out*(C_in+2),)     f32 SMEM   packed [w_0..w_{Cin-1}, gamma, beta] per out-channel
    # out_ref: (N, C_out, H+2, W+2)  f32 VMEM   padded conv -> BN(train) -> ReLU
    hp, wp = h + 2, w + 2
    pstride = c_in + 2

    # Load each input channel plane once: (H, W) values, no relayout.
    xs = [[x_ref[ni, ci] for ci in range(c_in)] for ni in range(n)]

    # ---- 1x1 conv as SMEM-scalar x vector FMAs on the VPU (MXU skipped) ----
    acc = []
    for ni in range(n):
        row = []
        for o in range(c_out):
            a = xs[ni][0] * p_ref[o * pstride + 0]
            for ci in range(1, c_in):
                a = a + xs[ni][ci] * p_ref[o * pstride + ci]
            row.append(a)                        # (H, W) conv output for (ni, o)
        acc.append(row)

    # ---- BatchNorm2d training-mode stats over ALL pixels of the padded output ----
    # The zero border contributes 0 to the sums but does count toward `count`
    # (= N * (H+2) * (W+2)), matching Conv2d(pad=1) -> BatchNorm2d exactly.
    inv_count = 1.0 / count
    for o in range(c_out):
        # Single pass: sum and sum-of-squares from the same vreg reads.
        t = acc[0][o]
        sq = acc[0][o] * acc[0][o]
        for ni in range(1, n):
            t = t + acc[ni][o]
            sq = sq + acc[ni][o] * acc[ni][o]
        s = jnp.sum(t)
        ss = jnp.sum(sq)
        mean = s * inv_count
        var = jnp.maximum(ss * inv_count - mean * mean, 0.0)  # clamp f32 cancellation
        gamma = p_ref[o * pstride + c_in]
        beta = p_ref[o * pstride + c_in + 1]
        scale = gamma * jax.lax.rsqrt(var + eps)
        shift = beta - mean * scale

        # Border pixels: conv output is 0 -> BN gives `shift`, then ReLU.
        # Fill the whole channel first, then overwrite the interior.
        out_ref[:, o, :, :] = jnp.full((n, hp, wp), jnp.maximum(shift, 0.0),
                                       dtype=out_ref.dtype)
        for ni in range(n):
            out_ref[ni, o, 1:h + 1, 1:w + 1] = jnp.maximum(
                acc[ni][o] * scale + shift, 0.0)


def warmupblock_forward(x_nchw, conv_w, gamma, beta, eps=1e-5):
    """x_nchw: (N, C_in, H, W) f32.  conv_w: (C_out, C_in) (1x1 kernel squeezed).
    Returns (N, C_out, H+2, W+2) f32, matching the PyTorch module (use_bn=True,
    BatchNorm2d in default training mode).  Running-stat buffer updates are a
    training side effect the forward output does not depend on and are omitted."""
    N, C_in, H, W = x_nchw.shape
    C_out = conv_w.shape[0]
    Hp, Wp = H + 2, W + 2
    count = float(N * Hp * Wp)

    x = x_nchw.astype(jnp.float32)
    # One packed parameter vector -> one SMEM transfer (instead of 3 VMEM DMAs).
    params = jnp.concatenate(
        [conv_w.reshape(C_out, C_in).astype(jnp.float32),
         gamma.reshape(C_out, 1).astype(jnp.float32),
         beta.reshape(C_out, 1).astype(jnp.float32)],
        axis=1).reshape(-1)                       # (C_out * (C_in + 2),)

    kernel = functools.partial(_warmup_kernel, n=N, c_in=C_in, c_out=C_out,
                               h=H, w=W, count=count, eps=eps)

    return pl.pallas_call(
        kernel,
        grid_spec=pl.GridSpec(
            grid=(1,),
            in_specs=[
                # Full-array blocks (last two dims equal the array dims -> legal).
                pl.BlockSpec((N, C_in, H, W), lambda i: (0, 0, 0, 0)),
                pl.BlockSpec(memory_space=pltpu.MemorySpace.SMEM),
            ],
            out_specs=pl.BlockSpec((N, C_out, Hp, Wp), lambda i: (0, 0, 0, 0)),
        ),
        out_shape=jax.ShapeDtypeStruct((N, C_out, Hp, Wp), jnp.float32),
        compiler_params=pltpu.CompilerParams(
            dimension_semantics=("arbitrary",),
            # Explicit (v5e scoped default is only 16 MiB); actual use is ~0.5 MB.
            vmem_limit_bytes=32 * 1024 * 1024,
        ),
    )(x, params)


def _reference(x_nchw, conv_w, gamma, beta, eps=1e-5):
    # Pure-JAX reference: 1x1 conv + zero pad + train-mode BN + ReLU.
    C_out = conv_w.shape[0]
    y = jnp.einsum("nchw,oc->nohw", x_nchw, conv_w)
    y = jnp.pad(y, ((0, 0), (0, 0), (1, 1), (1, 1)))
    mean = jnp.mean(y, axis=(0, 2, 3), keepdims=True)
    var = jnp.mean((y - mean) ** 2, axis=(0, 2, 3), keepdims=True)
    yn = (y - mean) / jnp.sqrt(var + eps)
    yn = yn * gamma.reshape(1, C_out, 1, 1) + beta.reshape(1, C_out, 1, 1)
    return jnp.maximum(yn, 0.0)


if __name__ == "__main__":
    key = jax.random.PRNGKey(0)
    k_x, k_w, k_g, k_b = jax.random.split(key, 4)

    N, C_in, H, W = 2, 4, 16, 16
    C_out = 8

    x = jax.random.normal(k_x, (N, C_in, H, W), dtype=jnp.float32)
    # PyTorch Conv2d weight is (C_out, C_in, 1, 1); keep the squeezed form.
    conv_w = jax.random.normal(k_w, (C_out, C_in), dtype=jnp.float32) * 0.5
    gamma = 1.0 + 0.1 * jax.random.normal(k_g, (C_out,), dtype=jnp.float32)
    beta = 0.1 * jax.random.normal(k_b, (C_out,), dtype=jnp.float32)

    fwd = jax.jit(warmupblock_forward)
    out = jax.block_until_ready(fwd(x, conv_w, gamma, beta))

    ref = _reference(x, conv_w, gamma, beta)
    assert out.shape == (N, C_out, H + 2, W + 2), out.shape
    assert jnp.allclose(out, ref, atol=1e-4, rtol=1e-4), "mismatch vs reference"

    print("KERNEL_OK")
</pallas_src>

<mosaic_0001>
module attributes {stable_mosaic.version = 11 : i64} {
  func.func @_warmup_kernel(%arg0: i32, %arg1: memref<2x4x16x16xf32, #tpu.memory_space<vmem>>, %arg2: memref<48xf32, #tpu.memory_space<smem>>, %arg3: memref<2x8x18x18xf32, #tpu.memory_space<vmem>>) attributes {dimension_semantics = [#tpu.dimension_semantics<arbitrary>], iteration_bounds = array<i64: 1>, scalar_prefetch = 0 : i64, scratch_operands = 0 : i64, tpu.core_type = #tpu.core_type<tc>, window_params = [{pipeline_mode = #tpu.pipeline_mode<synchronous>, transform_indices = @transform_0, window_bounds = array<i64: 2, 4, 16, 16>}, {transform_indices = @transform_1, window_bounds = array<i64: 48>}, {pipeline_mode = #tpu.pipeline_mode<synchronous>, transform_indices = @transform_2, window_bounds = array<i64: 2, 8, 18, 18>}]} {
    %c0 = arith.constant 0 : index
    %c0_0 = arith.constant 0 : index
    %c0_1 = arith.constant 0 : index
    %c0_2 = arith.constant 0 : index
    %0 = vector.load %arg1[%c0, %c0_0, %c0_1, %c0_2] : memref<2x4x16x16xf32, #tpu.memory_space<vmem>>, vector<1x1x16x16xf32>
    %1 = vector.shape_cast %0 : vector<1x1x16x16xf32> to vector<16x16xf32>
    %c0_3 = arith.constant 0 : index
    %c1 = arith.constant 1 : index
    %c0_4 = arith.constant 0 : index
    %c0_5 = arith.constant 0 : index
    %2 = vector.load %arg1[%c0_3, %c1, %c0_4, %c0_5] : memref<2x4x16x16xf32, #tpu.memory_space<vmem>>, vector<1x1x16x16xf32>
    %3 = vector.shape_cast %2 : vector<1x1x16x16xf32> to vector<16x16xf32>
    %c0_6 = arith.constant 0 : index
    %c2 = arith.constant 2 : index
    %c0_7 = arith.constant 0 : index
    %c0_8 = arith.constant 0 : index
    %4 = vector.load %arg1[%c0_6, %c2, %c0_7, %c0_8] : memref<2x4x16x16xf32, #tpu.memory_space<vmem>>, vector<1x1x16x16xf32>
    %5 = vector.shape_cast %4 : vector<1x1x16x16xf32> to vector<16x16xf32>
    %c0_9 = arith.constant 0 : index
    %c3 = arith.constant 3 : index
    %c0_10 = arith.constant 0 : index
    %c0_11 = arith.constant 0 : index
    %6 = vector.load %arg1[%c0_9, %c3, %c0_10, %c0_11] : memref<2x4x16x16xf32, #tpu.memory_space<vmem>>, vector<1x1x16x16xf32>
    %7 = vector.shape_cast %6 : vector<1x1x16x16xf32> to vector<16x16xf32>
    %c1_12 = arith.constant 1 : index
    %c0_13 = arith.constant 0 : index
    %c0_14 = arith.constant 0 : index
    %c0_15 = arith.constant 0 : index
    %8 = vector.load %arg1[%c1_12, %c0_13, %c0_14, %c0_15] : memref<2x4x16x16xf32, #tpu.memory_space<vmem>>, vector<1x1x16x16xf32>
    %9 = vector.shape_cast %8 : vector<1x1x16x16xf32> to vector<16x16xf32>
    %c1_16 = arith.constant 1 : index
    %c1_17 = arith.constant 1 : index
    %c0_18 = arith.constant 0 : index
    %c0_19 = arith.constant 0 : index
    %10 = vector.load %arg1[%c1_16, %c1_17, %c0_18, %c0_19] : memref<2x4x16x16xf32, #tpu.memory_space<vmem>>, vector<1x1x16x16xf32>
    %11 = vector.shape_cast %10 : vector<1x1x16x16xf32> to vector<16x16xf32>
    %c1_20 = arith.constant 1 : index
    %c2_21 = arith.constant 2 : index
    %c0_22 = arith.constant 0 : index
    %c0_23 = arith.constant 0 : index
    %12 = vector.load %arg1[%c1_20, %c2_21, %c0_22, %c0_23] : memref<2x4x16x16xf32, #tpu.memory_space<vmem>>, vector<1x1x16x16xf32>
    %13 = vector.shape_cast %12 : vector<1x1x16x16xf32> to vector<16x16xf32>
    %c1_24 = arith.constant 1 : index
    %c3_25 = arith.constant 3 : index
    %c0_26 = arith.constant 0 : index
    %c0_27 = arith.constant 0 : index
    %14 = vector.load %arg1[%c1_24, %c3_25, %c0_26, %c0_27] : memref<2x4x16x16xf32, #tpu.memory_space<vmem>>, vector<1x1x16x16xf32>
    %15 = vector.shape_cast %14 : vector<1x1x16x16xf32> to vector<16x16xf32>
    %c0_28 = arith.constant 0 : index
    %16 = memref.load %arg2[%c0_28] : memref<48xf32, #tpu.memory_space<smem>>
    %17 = vector.broadcast %16 : f32 to vector<16x16xf32>
    %18 = arith.mulf %1, %17 : vector<16x16xf32>
    %c1_29 = arith.constant 1 : index
    %19 = memref.load %arg2[%c1_29] : memref<48xf32, #tpu.memory_space<smem>>
    %20 = vector.broadcast %19 : f32 to vector<16x16xf32>
    %21 = arith.mulf %3, %20 : vector<16x16xf32>
    %22 = arith.addf %18, %21 : vector<16x16xf32>
    %c2_30 = arith.constant 2 : index
    %23 = memref.load %arg2[%c2_30] : memref<48xf32, #tpu.memory_space<smem>>
    %24 = vector.broadcast %23 : f32 to vector<16x16xf32>
    %25 = arith.mulf %5, %24 : vector<16x16xf32>
    %26 = arith.addf %22, %25 : vector<16x16xf32>
    %c3_31 = arith.constant 3 : index
    %27 = memref.load %arg2[%c3_31] : memref<48xf32, #tpu.memory_space<smem>>
    %28 = vector.broadcast %27 : f32 to vector<16x16xf32>
    %29 = arith.mulf %7, %28 : vector<16x16xf32>
    %30 = arith.addf %26, %29 : vector<16x16xf32>
    %c6 = arith.constant 6 : index
    %31 = memref.load %arg2[%c6] : memref<48xf32, #tpu.memory_space<smem>>
    %32 = vector.broadcast %31 : f32 to vector<16x16xf32>
    %33 = arith.mulf %1, %32 : vector<16x16xf32>
    %c7 = arith.constant 7 : index
    %34 = memref.load %arg2[%c7] : memref<48xf32, #tpu.memory_space<smem>>
    %35 = vector.broadcast %34 : f32 to vector<16x16xf32>
    %36 = arith.mulf %3, %35 : vector<16x16xf32>
    %37 = arith.addf %33, %36 : vector<16x16xf32>
    %c8 = arith.constant 8 : index
    %38 = memref.load %arg2[%c8] : memref<48xf32, #tpu.memory_space<smem>>
    %39 = vector.broadcast %38 : f32 to vector<16x16xf32>
    %40 = arith.mulf %5, %39 : vector<16x16xf32>
    %41 = arith.addf %37, %40 : vector<16x16xf32>
    %c9 = arith.constant 9 : index
    %42 = memref.load %arg2[%c9] : memref<48xf32, #tpu.memory_space<smem>>
    %43 = vector.broadcast %42 : f32 to vector<16x16xf32>
    %44 = arith.mulf %7, %43 : vector<16x16xf32>
    %45 = arith.addf %41, %44 : vector<16x16xf32>
    %c12 = arith.constant 12 : index
    %46 = memref.load %arg2[%c12] : memref<48xf32, #tpu.memory_space<smem>>
    %47 = vector.broadcast %46 : f32 to vector<16x16xf32>
    %48 = arith.mulf %1, %47 : vector<16x16xf32>
    %c13 = arith.constant 13 : index
    %49 = memref.load %arg2[%c13] : memref<48xf32, #tpu.memory_space<smem>>
    %50 = vector.broadcast %49 : f32 to vector<16x16xf32>
    %51 = arith.mulf %3, %50 : vector<16x16xf32>
    %52 = arith.addf %48, %51 : vector<16x16xf32>
    %c14 = arith.constant 14 : index
    %53 = memref.load %arg2[%c14] : memref<48xf32, #tpu.memory_space<smem>>
    %54 = vector.broadcast %53 : f32 to vector<16x16xf32>
    %55 = arith.mulf %5, %54 : vector<16x16xf32>
    %56 = arith.addf %52, %55 : vector<16x16xf32>
    %c15 = arith.constant 15 : index
    %57 = memref.load %arg2[%c15] : memref<48xf32, #tpu.memory_space<smem>>
    %58 = vector.broadcast %57 : f32 to vector<16x16xf32>
    %59 = arith.mulf %7, %58 : vector<16x16xf32>
    %60 = arith.addf %56, %59 : vector<16x16xf32>
    %c18 = arith.constant 18 : index
    %61 = memref.load %arg2[%c18] : memref<48xf32, #tpu.memory_space<smem>>
    %62 = vector.broadcast %61 : f32 to vector<16x16xf32>
    %63 = arith.mulf %1, %62 : vector<16x16xf32>
    %c19 = arith.constant 19 : index
    %64 = memref.load %arg2[%c19] : memref<48xf32, #tpu.memory_space<smem>>
    %65 = vector.broadcast %64 : f32 to vector<16x16xf32>
    %66 = arith.mulf %3, %65 : vector<16x16xf32>
    %67 = arith.addf %63, %66 : vector<16x16xf32>
    %c20 = arith.constant 20 : index
    %68 = memref.load %arg2[%c20] : memref<48xf32, #tpu.memory_space<smem>>
    %69 = vector.broadcast %68 : f32 to vector<16x16xf32>
    %70 = arith.mulf %5, %69 : vector<16x16xf32>
    %71 = arith.addf %67, %70 : vector<16x16xf32>
    %c21 = arith.constant 21 : index
    %72 = memref.load %arg2[%c21] : memref<48xf32, #tpu.memory_space<smem>>
    %73 = vector.broadcast %72 : f32 to vector<16x16xf32>
    %74 = arith.mulf %7, %73 : vector<16x16xf32>
    %75 = arith.addf %71, %74 : vector<16x16xf32>
    %c24 = arith.constant 24 : index
    %76 = memref.load %arg2[%c24] : memref<48xf32, #tpu.memory_space<smem>>
    %77 = vector.broadcast %76 : f32 to vector<16x16xf32>
    %78 = arith.mulf %1, %77 : vector<16x16xf32>
    %c25 = arith.constant 25 : index
    %79 = memref.load %arg2[%c25] : memref<48xf32, #tpu.memory_space<smem>>
    %80 = vector.broadcast %79 : f32 to vector<16x16xf32>
    %81 = arith.mulf %3, %80 : vector<16x16xf32>
    %82 = arith.addf %78, %81 : vector<16x16xf32>
    %c26 = arith.constant 26 : index
    %83 = memref.load %arg2[%c26] : memref<48xf32, #tpu.memory_space<smem>>
    %84 = vector.broadcast %83 : f32 to vector<16x16xf32>
    %85 = arith.mulf %5, %84 : vector<16x16xf32>
    %86 = arith.addf %82, %85 : vector<16x16xf32>
    %c27 = arith.constant 27 : index
    %87 = memref.load %arg2[%c27] : memref<48xf32, #tpu.memory_space<smem>>
    %88 = vector.broadcast %87 : f32 to vector<16x16xf32>
    %89 = arith.mulf %7, %88 : vector<16x16xf32>
    %90 = arith.addf %86, %89 : vector<16x16xf32>
    %c30 = arith.constant 30 : index
    %91 = memref.load %arg2[%c30] : memref<48xf32, #tpu.memory_space<smem>>
    %92 = vector.broadcast %91 : f32 to vector<16x16xf32>
    %93 = arith.mulf %1, %92 : vector<16x16xf32>
    %c31 = arith.constant 31 : index
    %94 = memref.load %arg2[%c31] : memref<48xf32, #tpu.memory_space<smem>>
    %95 = vector.broadcast %94 : f32 to vector<16x16xf32>
    %96 = arith.mulf %3, %95 : vector<16x16xf32>
    %97 = arith.addf %93, %96 : vector<16x16xf32>
    %c32 = arith.constant 32 : index
    %98 = memref.load %arg2[%c32] : memref<48xf32, #tpu.memory_space<smem>>
    %99 = vector.broadcast %98 : f32 to vector<16x16xf32>
    %100 = arith.mulf %5, %99 : vector<16x16xf32>
    %101 = arith.addf %97, %100 : vector<16x16xf32>
    %c33 = arith.constant 33 : index
    %102 = memref.load %arg2[%c33] : memref<48xf32, #tpu.memory_space<smem>>
    %103 = vector.broadcast %102 : f32 to vector<16x16xf32>
    %104 = arith.mulf %7, %103 : vector<16x16xf32>
    %105 = arith.addf %101, %104 : vector<16x16xf32>
    %c36 = arith.constant 36 : index
    %106 = memref.load %arg2[%c36] : memref<48xf32, #tpu.memory_space<smem>>
    %107 = vector.broadcast %106 : f32 to vector<16x16xf32>
    %108 = arith.mulf %1, %107 : vector<16x16xf32>
    %c37 = arith.constant 37 : index
    %109 = memref.load %arg2[%c37] : memref<48xf32, #tpu.memory_space<smem>>
    %110 = vector.broadcast %109 : f32 to vector<16x16xf32>
    %111 = arith.mulf %3, %110 : vector<16x16xf32>
    %112 = arith.addf %108, %111 : vector<16x16xf32>
    %c38 = arith.constant 38 : index
    %113 = memref.load %arg2[%c38] : memref<48xf32, #tpu.memory_space<smem>>
    %114 = vector.broadcast %113 : f32 to vector<16x16xf32>
    %115 = arith.mulf %5, %114 : vector<16x16xf32>
    %116 = arith.addf %112, %115 : vector<16x16xf32>
    %c39 = arith.constant 39 : index
    %117 = memref.load %arg2[%c39] : memref<48xf32, #tpu.memory_space<smem>>
    %118 = vector.broadcast %117 : f32 to vector<16x16xf32>
    %119 = arith.mulf %7, %118 : vector<16x16xf32>
    %120 = arith.addf %116, %119 : vector<16x16xf32>
    %c42 = arith.constant 42 : index
    %121 = memref.load %arg2[%c42] : memref<48xf32, #tpu.memory_space<smem>>
    %122 = vector.broadcast %121 : f32 to vector<16x16xf32>
    %123 = arith.mulf %1, %122 : vector<16x16xf32>
    %c43 = arith.constant 43 : index
    %124 = memref.load %arg2[%c43] : memref<48xf32, #tpu.memory_space<smem>>
    %125 = vector.broadcast %124 : f32 to vector<16x16xf32>
    %126 = arith.mulf %3, %125 : vector<16x16xf32>
    %127 = arith.addf %123, %126 : vector<16x16xf32>
    %c44 = arith.constant 44 : index
    %128 = memref.load %arg2[%c44] : memref<48xf32, #tpu.memory_space<smem>>
    %129 = vector.broadcast %128 : f32 to vector<16x16xf32>
    %130 = arith.mulf %5, %129 : vector<16x16xf32>
    %131 = arith.addf %127, %130 : vector<16x16xf32>
    %c45 = arith.constant 45 : index
    %132 = memref.load %arg2[%c45] : memref<48xf32, #tpu.memory_space<smem>>
    %133 = vector.broadcast %132 : f32 to vector<16x16xf32>
    %134 = arith.mulf %7, %133 : vector<16x16xf32>
    %135 = arith.addf %131, %134 : vector<16x16xf32>
    %c0_32 = arith.constant 0 : index
    %136 = memref.load %arg2[%c0_32] : memref<48xf32, #tpu.memory_space<smem>>
    %137 = vector.broadcast %136 : f32 to vector<16x16xf32>
    %138 = arith.mulf %9, %137 : vector<16x16xf32>
    %c1_33 = arith.constant 1 : index
    %139 = memref.load %arg2[%c1_33] : memref<48xf32, #tpu.memory_space<smem>>
    %140 = vector.broadcast %139 : f32 to vector<16x16xf32>
    %141 = arith.mulf %11, %140 : vector<16x16xf32>
    %142 = arith.addf %138, %141 : vector<16x16xf32>
    %c2_34 = arith.constant 2 : index
    %143 = memref.load %arg2[%c2_34] : memref<48xf32, #tpu.memory_space<smem>>
    %144 = vector.broadcast %143 : f32 to vector<16x16xf32>
    %145 = arith.mulf %13, %144 : vector<16x16xf32>
    %146 = arith.addf %142, %145 : vector<16x16xf32>
    %c3_35 = arith.constant 3 : index
    %147 = memref.load %arg2[%c3_35] : memref<48xf32, #tpu.memory_space<smem>>
    %148 = vector.broadcast %147 : f32 to vector<16x16xf32>
    %149 = arith.mulf %15, %148 : vector<16x16xf32>
    %150 = arith.addf %146, %149 : vector<16x16xf32>
    %c6_36 = arith.constant 6 : index
    %151 = memref.load %arg2[%c6_36] : memref<48xf32, #tpu.memory_space<smem>>
    %152 = vector.broadcast %151 : f32 to vector<16x16xf32>
    %153 = arith.mulf %9, %152 : vector<16x16xf32>
    %c7_37 = arith.constant 7 : index
    %154 = memref.load %arg2[%c7_37] : memref<48xf32, #tpu.memory_space<smem>>
    %155 = vector.broadcast %154 : f32 to vector<16x16xf32>
    %156 = arith.mulf %11, %155 : vector<16x16xf32>
    %157 = arith.addf %153, %156 : vector<16x16xf32>
    %c8_38 = arith.constant 8 : index
    %158 = memref.load %arg2[%c8_38] : memref<48xf32, #tpu.memory_space<smem>>
    %159 = vector.broadcast %158 : f32 to vector<16x16xf32>
    %160 = arith.mulf %13, %159 : vector<16x16xf32>
    %161 = arith.addf %157, %160 : vector<16x16xf32>
    %c9_39 = arith.constant 9 : index
    %162 = memref.load %arg2[%c9_39] : memref<48xf32, #tpu.memory_space<smem>>
    %163 = vector.broadcast %162 : f32 to vector<16x16xf32>
    %164 = arith.mulf %15, %163 : vector<16x16xf32>
    %165 = arith.addf %161, %164 : vector<16x16xf32>
    %c12_40 = arith.constant 12 : index
    %166 = memref.load %arg2[%c12_40] : memref<48xf32, #tpu.memory_space<smem>>
    %167 = vector.broadcast %166 : f32 to vector<16x16xf32>
    %168 = arith.mulf %9, %167 : vector<16x16xf32>
    %c13_41 = arith.constant 13 : index
    %169 = memref.load %arg2[%c13_41] : memref<48xf32, #tpu.memory_space<smem>>
    %170 = vector.broadcast %169 : f32 to vector<16x16xf32>
    %171 = arith.mulf %11, %170 : vector<16x16xf32>
    %172 = arith.addf %168, %171 : vector<16x16xf32>
    %c14_42 = arith.constant 14 : index
    %173 = memref.load %arg2[%c14_42] : memref<48xf32, #tpu.memory_space<smem>>
    %174 = vector.broadcast %173 : f32 to vector<16x16xf32>
    %175 = arith.mulf %13, %174 : vector<16x16xf32>
    %176 = arith.addf %172, %175 : vector<16x16xf32>
    %c15_43 = arith.constant 15 : index
    %177 = memref.load %arg2[%c15_43] : memref<48xf32, #tpu.memory_space<smem>>
    %178 = vector.broadcast %177 : f32 to vector<16x16xf32>
    %179 = arith.mulf %15, %178 : vector<16x16xf32>
    %180 = arith.addf %176, %179 : vector<16x16xf32>
    %c18_44 = arith.constant 18 : index
    %181 = memref.load %arg2[%c18_44] : memref<48xf32, #tpu.memory_space<smem>>
    %182 = vector.broadcast %181 : f32 to vector<16x16xf32>
    %183 = arith.mulf %9, %182 : vector<16x16xf32>
    %c19_45 = arith.constant 19 : index
    %184 = memref.load %arg2[%c19_45] : memref<48xf32, #tpu.memory_space<smem>>
    %185 = vector.broadcast %184 : f32 to vector<16x16xf32>
    %186 = arith.mulf %11, %185 : vector<16x16xf32>
    %187 = arith.addf %183, %186 : vector<16x16xf32>
    %c20_46 = arith.constant 20 : index
    %188 = memref.load %arg2[%c20_46] : memref<48xf32, #tpu.memory_space<smem>>
    %189 = vector.broadcast %188 : f32 to vector<16x16xf32>
    %190 = arith.mulf %13, %189 : vector<16x16xf32>
    %191 = arith.addf %187, %190 : vector<16x16xf32>
    %c21_47 = arith.constant 21 : index
    %192 = memref.load %arg2[%c21_47] : memref<48xf32, #tpu.memory_space<smem>>
    %193 = vector.broadcast %192 : f32 to vector<16x16xf32>
    %194 = arith.mulf %15, %193 : vector<16x16xf32>
    %195 = arith.addf %191, %194 : vector<16x16xf32>
    %c24_48 = arith.constant 24 : index
    %196 = memref.load %arg2[%c24_48] : memref<48xf32, #tpu.memory_space<smem>>
    %197 = vector.broadcast %196 : f32 to vector<16x16xf32>
    %198 = arith.mulf %9, %197 : vector<16x16xf32>
    %c25_49 = arith.constant 25 : index
    %199 = memref.load %arg2[%c25_49] : memref<48xf32, #tpu.memory_space<smem>>
    %200 = vector.broadcast %199 : f32 to vector<16x16xf32>
    %201 = arith.mulf %11, %200 : vector<16x16xf32>
    %202 = arith.addf %198, %201 : vector<16x16xf32>
    %c26_50 = arith.constant 26 : index
    %203 = memref.load %arg2[%c26_50] : memref<48xf32, #tpu.memory_space<smem>>
    %204 = vector.broadcast %203 : f32 to vector<16x16xf32>
    %205 = arith.mulf %13, %204 : vector<16x16xf32>
    %206 = arith.addf %202, %205 : vector<16x16xf32>
    %c27_51 = arith.constant 27 : index
    %207 = memref.load %arg2[%c27_51] : memref<48xf32, #tpu.memory_space<smem>>
    %208 = vector.broadcast %207 : f32 to vector<16x16xf32>
    %209 = arith.mulf %15, %208 : vector<16x16xf32>
    %210 = arith.addf %206, %209 : vector<16x16xf32>
    %c30_52 = arith.constant 30 : index
    %211 = memref.load %arg2[%c30_52] : memref<48xf32, #tpu.memory_space<smem>>
    %212 = vector.broadcast %211 : f32 to vector<16x16xf32>
    %213 = arith.mulf %9, %212 : vector<16x16xf32>
    %c31_53 = arith.constant 31 : index
    %214 = memref.load %arg2[%c31_53] : memref<48xf32, #tpu.memory_space<smem>>
    %215 = vector.broadcast %214 : f32 to vector<16x16xf32>
    %216 = arith.mulf %11, %215 : vector<16x16xf32>
    %217 = arith.addf %213, %216 : vector<16x16xf32>
    %c32_54 = arith.constant 32 : index
    %218 = memref.load %arg2[%c32_54] : memref<48xf32, #tpu.memory_space<smem>>
    %219 = vector.broadcast %218 : f32 to vector<16x16xf32>
    %220 = arith.mulf %13, %219 : vector<16x16xf32>
    %221 = arith.addf %217, %220 : vector<16x16xf32>
    %c33_55 = arith.constant 33 : index
    %222 = memref.load %arg2[%c33_55] : memref<48xf32, #tpu.memory_space<smem>>
    %223 = vector.broadcast %222 : f32 to vector<16x16xf32>
    %224 = arith.mulf %15, %223 : vector<16x16xf32>
    %225 = arith.addf %221, %224 : vector<16x16xf32>
    %c36_56 = arith.constant 36 : index
    %226 = memref.load %arg2[%c36_56] : memref<48xf32, #tpu.memory_space<smem>>
    %227 = vector.broadcast %226 : f32 to vector<16x16xf32>
    %228 = arith.mulf %9, %227 : vector<16x16xf32>
    %c37_57 = arith.constant 37 : index
    %229 = memref.load %arg2[%c37_57] : memref<48xf32, #tpu.memory_space<smem>>
    %230 = vector.broadcast %229 : f32 to vector<16x16xf32>
    %231 = arith.mulf %11, %230 : vector<16x16xf32>
    %232 = arith.addf %228, %231 : vector<16x16xf32>
    %c38_58 = arith.constant 38 : index
    %233 = memref.load %arg2[%c38_58] : memref<48xf32, #tpu.memory_space<smem>>
    %234 = vector.broadcast %233 : f32 to vector<16x16xf32>
    %235 = arith.mulf %13, %234 : vector<16x16xf32>
    %236 = arith.addf %232, %235 : vector<16x16xf32>
    %c39_59 = arith.constant 39 : index
    %237 = memref.load %arg2[%c39_59] : memref<48xf32, #tpu.memory_space<smem>>
    %238 = vector.broadcast %237 : f32 to vector<16x16xf32>
    %239 = arith.mulf %15, %238 : vector<16x16xf32>
    %240 = arith.addf %236, %239 : vector<16x16xf32>
    %c42_60 = arith.constant 42 : index
    %241 = memref.load %arg2[%c42_60] : memref<48xf32, #tpu.memory_space<smem>>
    %242 = vector.broadcast %241 : f32 to vector<16x16xf32>
    %243 = arith.mulf %9, %242 : vector<16x16xf32>
    %c43_61 = arith.constant 43 : index
    %244 = memref.load %arg2[%c43_61] : memref<48xf32, #tpu.memory_space<smem>>
    %245 = vector.broadcast %244 : f32 to vector<16x16xf32>
    %246 = arith.mulf %11, %245 : vector<16x16xf32>
    %247 = arith.addf %243, %246 : vector<16x16xf32>
    %c44_62 = arith.constant 44 : index
    %248 = memref.load %arg2[%c44_62] : memref<48xf32, #tpu.memory_space<smem>>
    %249 = vector.broadcast %248 : f32 to vector<16x16xf32>
    %250 = arith.mulf %13, %249 : vector<16x16xf32>
    %251 = arith.addf %247, %250 : vector<16x16xf32>
    %c45_63 = arith.constant 45 : index
    %252 = memref.load %arg2[%c45_63] : memref<48xf32, #tpu.memory_space<smem>>
    %253 = vector.broadcast %252 : f32 to vector<16x16xf32>
    %254 = arith.mulf %15, %253 : vector<16x16xf32>
    %255 = arith.addf %251, %254 : vector<16x16xf32>
    %256 = arith.mulf %30, %30 : vector<16x16xf32>
    %257 = arith.addf %30, %150 : vector<16x16xf32>
    %258 = arith.mulf %150, %150 : vector<16x16xf32>
    %259 = arith.addf %256, %258 : vector<16x16xf32>
    %260 = vector.shape_cast %257 : vector<16x16xf32> to vector<1x16x16xf32>
    %cst = arith.constant dense<0.000000e+00> : vector<1xf32>
    %261 = vector.multi_reduction <add>, %260, %cst [1, 2] : vector<1x16x16xf32> to vector<1xf32>
    %262 = vector.shape_cast %261 : vector<1xf32> to vector<1x1x1xf32>
    %263 = vector.extract %262[0, 0, 0] : f32 from vector<1x1x1xf32>
    %264 = vector.shape_cast %259 : vector<16x16xf32> to vector<1x16x16xf32>
    %cst_64 = arith.constant dense<0.000000e+00> : vector<1xf32>
    %265 = vector.multi_reduction <add>, %264, %cst_64 [1, 2] : vector<1x16x16xf32> to vector<1xf32>
    %266 = vector.shape_cast %265 : vector<1xf32> to vector<1x1x1xf32>
    %267 = vector.extract %266[0, 0, 0] : f32 from vector<1x1x1xf32>
    %cst_65 = arith.constant 0.00154320989 : f32
    %268 = arith.mulf %263, %cst_65 : f32
    %cst_66 = arith.constant 0.00154320989 : f32
    %269 = arith.mulf %267, %cst_66 : f32
    %270 = arith.mulf %268, %268 : f32
    %271 = arith.subf %269, %270 : f32
    %cst_67 = arith.constant 0.000000e+00 : f32
    %272 = arith.maximumf %271, %cst_67 : f32
    %c4 = arith.constant 4 : index
    %273 = memref.load %arg2[%c4] : memref<48xf32, #tpu.memory_space<smem>>
    %c5 = arith.constant 5 : index
    %274 = memref.load %arg2[%c5] : memref<48xf32, #tpu.memory_space<smem>>
    %cst_68 = arith.constant 9.99999974E-6 : f32
    %275 = arith.addf %272, %cst_68 : f32
    %276 = math.rsqrt %275 : f32
    %277 = arith.mulf %273, %276 : f32
    %278 = arith.mulf %268, %277 : f32
    %279 = arith.subf %274, %278 : f32
    %cst_69 = arith.constant 0.000000e+00 : f32
    %280 = arith.maximumf %279, %cst_69 : f32
    %281 = vector.broadcast %280 : f32 to vector<2x18x18xf32>
    %c0_70 = arith.constant 0 : index
    %c0_71 = arith.constant 0 : index
    %c0_72 = arith.constant 0 : index
    %c0_73 = arith.constant 0 : index
    %282 = vector.load %arg3[%c0_70, %c0_71, %c0_72, %c0_73] : memref<2x8x18x18xf32, #tpu.memory_space<vmem>>, vector<2x1x18x18xf32>
    %283 = vector.shape_cast %282 : vector<2x1x18x18xf32> to vector<2x18x18xf32>
    %284 = vector.shape_cast %281 : vector<2x18x18xf32> to vector<2x1x18x18xf32>
    tpu.vector_store %arg3[%c0_70, %c0_71, %c0_72, %c0_73], %284 {strides = array<i32>} : memref<2x8x18x18xf32, #tpu.memory_space<vmem>>, vector<2x1x18x18xf32>,
    %285 = vector.broadcast %277 : f32 to vector<16x16xf32>
    %286 = arith.mulf %30, %285 : vector<16x16xf32>
    %287 = vector.broadcast %279 : f32 to vector<16x16xf32>
    %288 = arith.addf %286, %287 : vector<16x16xf32>
    %cst_74 = arith.constant 0.000000e+00 : f32
    %289 = vector.broadcast %cst_74 : f32 to vector<16x16xf32>
    %290 = arith.maximumf %288, %289 : vector<16x16xf32>
    %c0_75 = arith.constant 0 : index
    %c0_76 = arith.constant 0 : index
    %c1_77 = arith.constant 1 : index
    %c1_78 = arith.constant 1 : index
    %291 = vector.load %arg3[%c0_75, %c0_76, %c1_77, %c1_78] : memref<2x8x18x18xf32, #tpu.memory_space<vmem>>, vector<1x1x16x16xf32>
    %292 = vector.shape_cast %291 : vector<1x1x16x16xf32> to vector<16x16xf32>
    %293 = vector.shape_cast %290 : vector<16x16xf32> to vector<1x1x16x16xf32>
    tpu.vector_store %arg3[%c0_75, %c0_76, %c1_77, %c1_78], %293 {strides = array<i32>} : memref<2x8x18x18xf32, #tpu.memory_space<vmem>>, vector<1x1x16x16xf32>,
    %294 = vector.broadcast %277 : f32 to vector<16x16xf32>
    %295 = arith.mulf %150, %294 : vector<16x16xf32>
    %296 = vector.broadcast %279 : f32 to vector<16x16xf32>
    %297 = arith.addf %295, %296 : vector<16x16xf32>
    %cst_79 = arith.constant 0.000000e+00 : f32
    %298 = vector.broadcast %cst_79 : f32 to vector<16x16xf32>
    %299 = arith.maximumf %297, %298 : vector<16x16xf32>
    %c1_80 = arith.constant 1 : index
    %c0_81 = arith.constant 0 : index
    %c1_82 = arith.constant 1 : index
    %c1_83 = arith.constant 1 : index
    %300 = vector.load %arg3[%c1_80, %c0_81, %c1_82, %c1_83] : memref<2x8x18x18xf32, #tpu.memory_space<vmem>>, vector<1x1x16x16xf32>
    %301 = vector.shape_cast %300 : vector<1x1x16x16xf32> to vector<16x16xf32>
    %302 = vector.shape_cast %299 : vector<16x16xf32> to vector<1x1x16x16xf32>
    tpu.vector_store %arg3[%c1_80, %c0_81, %c1_82, %c1_83], %302 {strides = array<i32>} : memref<2x8x18x18xf32, #tpu.memory_space<vmem>>, vector<1x1x16x16xf32>,
    %303 = arith.mulf %45, %45 : vector<16x16xf32>
    %304 = arith.addf %45, %165 : vector<16x16xf32>
    %305 = arith.mulf %165, %165 : vector<16x16xf32>
    %306 = arith.addf %303, %305 : vector<16x16xf32>
    %307 = vector.shape_cast %304 : vector<16x16xf32> to vector<1x16x16xf32>
    %cst_84 = arith.constant dense<0.000000e+00> : vector<1xf32>
    %308 = vector.multi_reduction <add>, %307, %cst_84 [1, 2] : vector<1x16x16xf32> to vector<1xf32>
    %309 = vector.shape_cast %308 : vector<1xf32> to vector<1x1x1xf32>
    %310 = vector.extract %309[0, 0, 0] : f32 from vector<1x1x1xf32>
    %311 = vector.shape_cast %306 : vector<16x16xf32> to vector<1x16x16xf32>
    %cst_85 = arith.constant dense<0.000000e+00> : vector<1xf32>
    %312 = vector.multi_reduction <add>, %311, %cst_85 [1, 2] : vector<1x16x16xf32> to vector<1xf32>
    %313 = vector.shape_cast %312 : vector<1xf32> to vector<1x1x1xf32>
    %314 = vector.extract %313[0, 0, 0] : f32 from vector<1x1x1xf32>
    %cst_86 = arith.constant 0.00154320989 : f32
    %315 = arith.mulf %310, %cst_86 : f32
    %cst_87 = arith.constant 0.00154320989 : f32
    %316 = arith.mulf %314, %cst_87 : f32
    %317 = arith.mulf %315, %315 : f32
    %318 = arith.subf %316, %317 : f32
    %cst_88 = arith.constant 0.000000e+00 : f32
    %319 = arith.maximumf %318, %cst_88 : f32
    %c10 = arith.constant 10 : index
    %320 = memref.load %arg2[%c10] : memref<48xf32, #tpu.memory_space<smem>>
    %c11 = arith.constant 11 : index
    %321 = memref.load %arg2[%c11] : memref<48xf32, #tpu.memory_space<smem>>
    %cst_89 = arith.constant 9.99999974E-6 : f32
    %322 = arith.addf %319, %cst_89 : f32
    %323 = math.rsqrt %322 : f32
    %324 = arith.mulf %320, %323 : f32
    %325 = arith.mulf %315, %324 : f32
    %326 = arith.subf %321, %325 : f32
    %cst_90 = arith.constant 0.000000e+00 : f32
    %327 = arith.maximumf %326, %cst_90 : f32
    %328 = vector.broadcast %327 : f32 to vector<2x18x18xf32>
    %c0_91 = arith.constant 0 : index
    %c1_92 = arith.constant 1 : index
    %c0_93 = arith.constant 0 : index
    %c0_94 = arith.constant 0 : index
    %329 = vector.load %arg3[%c0_91, %c1_92, %c0_93, %c0_94] : memref<2x8x18x18xf32, #tpu.memory_space<vmem>>, vector<2x1x18x18xf32>
    %330 = vector.shape_cast %329 : vector<2x1x18x18xf32> to vector<2x18x18xf32>
    %331 = vector.shape_cast %328 : vector<2x18x18xf32> to vector<2x1x18x18xf32>
    tpu.vector_store %arg3[%c0_91, %c1_92, %c0_93, %c0_94], %331 {strides = array<i32>} : memref<2x8x18x18xf32, #tpu.memory_space<vmem>>, vector<2x1x18x18xf32>,
    %332 = vector.broadcast %324 : f32 to vector<16x16xf32>
    %333 = arith.mulf %45, %332 : vector<16x16xf32>
    %334 = vector.broadcast %326 : f32 to vector<16x16xf32>
    %335 = arith.addf %333, %334 : vector<16x16xf32>
    %cst_95 = arith.constant 0.000000e+00 : f32
    %336 = vector.broadcast %cst_95 : f32 to vector<16x16xf32>
    %337 = arith.maximumf %335, %336 : vector<16x16xf32>
    %c0_96 = arith.constant 0 : index
    %c1_97 = arith.constant 1 : index
    %c1_98 = arith.constant 1 : index
    %c1_99 = arith.constant 1 : index
    %338 = vector.load %arg3[%c0_96, %c1_97, %c1_98, %c1_99] : memref<2x8x18x18xf32, #tpu.memory_space<vmem>>, vector<1x1x16x16xf32>
    %339 = vector.shape_cast %338 : vector<1x1x16x16xf32> to vector<16x16xf32>
    %340 = vector.shape_cast %337 : vector<16x16xf32> to vector<1x1x16x16xf32>
    tpu.vector_store %arg3[%c0_96, %c1_97, %c1_98, %c1_99], %340 {strides = array<i32>} : memref<2x8x18x18xf32, #tpu.memory_space<vmem>>, vector<1x1x16x16xf32>,
    %341 = vector.broadcast %324 : f32 to vector<16x16xf32>
    %342 = arith.mulf %165, %341 : vector<16x16xf32>
    %343 = vector.broadcast %326 : f32 to vector<16x16xf32>
    %344 = arith.addf %342, %343 : vector<16x16xf32>
    %cst_100 = arith.constant 0.000000e+00 : f32
    %345 = vector.broadcast %cst_100 : f32 to vector<16x16xf32>
    %346 = arith.maximumf %344, %345 : vector<16x16xf32>
    %c1_101 = arith.constant 1 : index
    %c1_102 = arith.constant 1 : index
    %c1_103 = arith.constant 1 : index
    %c1_104 = arith.constant 1 : index
    %347 = vector.load %arg3[%c1_101, %c1_102, %c1_103, %c1_104] : memref<2x8x18x18xf32, #tpu.memory_space<vmem>>, vector<1x1x16x16xf32>
    %348 = vector.shape_cast %347 : vector<1x1x16x16xf32> to vector<16x16xf32>
    %349 = vector.shape_cast %346 : vector<16x16xf32> to vector<1x1x16x16xf32>
    tpu.vector_store %arg3[%c1_101, %c1_102, %c1_103, %c1_104], %349 {strides = array<i32>} : memref<2x8x18x18xf32, #tpu.memory_space<vmem>>, vector<1x1x16x16xf32>,
    %350 = arith.mulf %60, %60 : vector<16x16xf32>
    %351 = arith.addf %60, %180 : vector<16x16xf32>
    %352 = arith.mulf %180, %180 : vector<16x16xf32>
    %353 = arith.addf %350, %352 : vector<16x16xf32>
    %354 = vector.shape_cast %351 : vector<16x16xf32> to vector<1x16x16xf32>
    %cst_105 = arith.constant dense<0.000000e+00> : vector<1xf32>
    %355 = vector.multi_reduction <add>, %354, %cst_105 [1, 2] : vector<1x16x16xf32> to vector<1xf32>
    %356 = vector.shape_cast %355 : vector<1xf32> to vector<1x1x1xf32>
    %357 = vector.extract %356[0, 0, 0] : f32 from vector<1x1x1xf32>
    %358 = vector.shape_cast %353 : vector<16x16xf32> to vector<1x16x16xf32>
    %cst_106 = arith.constant dense<0.000000e+00> : vector<1xf32>
    %359 = vector.multi_reduction <add>, %358, %cst_106 [1, 2] : vector<1x16x16xf32> to vector<1xf32>
    %360 = vector.shape_cast %359 : vector<1xf32> to vector<1x1x1xf32>
    %361 = vector.extract %360[0, 0, 0] : f32 from vector<1x1x1xf32>
    %cst_107 = arith.constant 0.00154320989 : f32
    %362 = arith.mulf %357, %cst_107 : f32
    %cst_108 = arith.constant 0.00154320989 : f32
    %363 = arith.mulf %361, %cst_108 : f32
    %364 = arith.mulf %362, %362 : f32
    %365 = arith.subf %363, %364 : f32
    %cst_109 = arith.constant 0.000000e+00 : f32
    %366 = arith.maximumf %365, %cst_109 : f32
    %c16 = arith.constant 16 : index
    %367 = memref.load %arg2[%c16] : memref<48xf32, #tpu.memory_space<smem>>
    %c17 = arith.constant 17 : index
    %368 = memref.load %arg2[%c17] : memref<48xf32, #tpu.memory_space<smem>>
    %cst_110 = arith.constant 9.99999974E-6 : f32
    %369 = arith.addf %366, %cst_110 : f32
    %370 = math.rsqrt %369 : f32
    %371 = arith.mulf %367, %370 : f32
    %372 = arith.mulf %362, %371 : f32
    %373 = arith.subf %368, %372 : f32
    %cst_111 = arith.constant 0.000000e+00 : f32
    %374 = arith.maximumf %373, %cst_111 : f32
    %375 = vector.broadcast %374 : f32 to vector<2x18x18xf32>
    %c0_112 = arith.constant 0 : index
    %c2_113 = arith.constant 2 : index
    %c0_114 = arith.constant 0 : index
    %c0_115 = arith.constant 0 : index
    %376 = vector.load %arg3[%c0_112, %c2_113, %c0_114, %c0_115] : memref<2x8x18x18xf32, #tpu.memory_space<vmem>>, vector<2x1x18x18xf32>
    %377 = vector.shape_cast %376 : vector<2x1x18x18xf32> to vector<2x18x18xf32>
    %378 = vector.shape_cast %375 : vector<2x18x18xf32> to vector<2x1x18x18xf32>
    tpu.vector_store %arg3[%c0_112, %c2_113, %c0_114, %c0_115], %378 {strides = array<i32>} : memref<2x8x18x18xf32, #tpu.memory_space<vmem>>, vector<2x1x18x18xf32>,
    %379 = vector.broadcast %371 : f32 to vector<16x16xf32>
    %380 = arith.mulf %60, %379 : vector<16x16xf32>
    %381 = vector.broadcast %373 : f32 to vector<16x16xf32>
    %382 = arith.addf %380, %381 : vector<16x16xf32>
    %cst_116 = arith.constant 0.000000e+00 : f32
    %383 = vector.broadcast %cst_116 : f32 to vector<16x16xf32>
    %384 = arith.maximumf %382, %383 : vector<16x16xf32>
    %c0_117 = arith.constant 0 : index
    %c2_118 = arith.constant 2 : index
    %c1_119 = arith.constant 1 : index
    %c1_120 = arith.constant 1 : index
    %385 = vector.load %arg3[%c0_117, %c2_118, %c1_119, %c1_120] : memref<2x8x18x18xf32, #tpu.memory_space<vmem>>, vector<1x1x16x16xf32>
    %386 = vector.shape_cast %385 : vector<1x1x16x16xf32> to vector<16x16xf32>
    %387 = vector.shape_cast %384 : vector<16x16xf32> to vector<1x1x16x16xf32>
    tpu.vector_store %arg3[%c0_117, %c2_118, %c1_119, %c1_120], %387 {strides = array<i32>} : memref<2x8x18x18xf32, #tpu.memory_space<vmem>>, vector<1x1x16x16xf32>,
    %388 = vector.broadcast %371 : f32 to vector<16x16xf32>
    %389 = arith.mulf %180, %388 : vector<16x16xf32>
    %390 = vector.broadcast %373 : f32 to vector<16x16xf32>
    %391 = arith.addf %389, %390 : vector<16x16xf32>
    %cst_121 = arith.constant 0.000000e+00 : f32
    %392 = vector.broadcast %cst_121 : f32 to vector<16x16xf32>
    %393 = arith.maximumf %391, %392 : vector<16x16xf32>
    %c1_122 = arith.constant 1 : index
    %c2_123 = arith.constant 2 : index
    %c1_124 = arith.constant 1 : index
    %c1_125 = arith.constant 1 : index
    %394 = vector.load %arg3[%c1_122, %c2_123, %c1_124, %c1_125] : memref<2x8x18x18xf32, #tpu.memory_space<vmem>>, vector<1x1x16x16xf32>
    %395 = vector.shape_cast %394 : vector<1x1x16x16xf32> to vector<16x16xf32>
    %396 = vector.shape_cast %393 : vector<16x16xf32> to vector<1x1x16x16xf32>
    tpu.vector_store %arg3[%c1_122, %c2_123, %c1_124, %c1_125], %396 {strides = array<i32>} : memref<2x8x18x18xf32, #tpu.memory_space<vmem>>, vector<1x1x16x16xf32>,
    %397 = arith.mulf %75, %75 : vector<16x16xf32>
    %398 = arith.addf %75, %195 : vector<16x16xf32>
    %399 = arith.mulf %195, %195 : vector<16x16xf32>
    %400 = arith.addf %397, %399 : vector<16x16xf32>
    %401 = vector.shape_cast %398 : vector<16x16xf32> to vector<1x16x16xf32>
    %cst_126 = arith.constant dense<0.000000e+00> : vector<1xf32>
    %402 = vector.multi_reduction <add>, %401, %cst_126 [1, 2] : vector<1x16x16xf32> to vector<1xf32>
    %403 = vector.shape_cast %402 : vector<1xf32> to vector<1x1x1xf32>
    %404 = vector.extract %403[0, 0, 0] : f32 from vector<1x1x1xf32>
    %405 = vector.shape_cast %400 : vector<16x16xf32> to vector<1x16x16xf32>
    %cst_127 = arith.constant dense<0.000000e+00> : vector<1xf32>
    %406 = vector.multi_reduction <add>, %405, %cst_127 [1, 2] : vector<1x16x16xf32> to vector<1xf32>
    %407 = vector.shape_cast %406 : vector<1xf32> to vector<1x1x1xf32>
    %408 = vector.extract %407[0, 0, 0] : f32 from vector<1x1x1xf32>
    %cst_128 = arith.constant 0.00154320989 : f32
    %409 = arith.mulf %404, %cst_128 : f32
    %cst_129 = arith.constant 0.00154320989 : f32
    %410 = arith.mulf %408, %cst_129 : f32
    %411 = arith.mulf %409, %409 : f32
    %412 = arith.subf %410, %411 : f32
    %cst_130 = arith.constant 0.000000e+00 : f32
    %413 = arith.maximumf %412, %cst_130 : f32
    %c22 = arith.constant 22 : index
    %414 = memref.load %arg2[%c22] : memref<48xf32, #tpu.memory_space<smem>>
    %c23 = arith.constant 23 : index
    %415 = memref.load %arg2[%c23] : memref<48xf32, #tpu.memory_space<smem>>
    %cst_131 = arith.constant 9.99999974E-6 : f32
    %416 = arith.addf %413, %cst_131 : f32
    %417 = math.rsqrt %416 : f32
    %418 = arith.mulf %414, %417 : f32
    %419 = arith.mulf %409, %418 : f32
    %420 = arith.subf %415, %419 : f32
    %cst_132 = arith.constant 0.000000e+00 : f32
    %421 = arith.maximumf %420, %cst_132 : f32
    %422 = vector.broadcast %421 : f32 to vector<2x18x18xf32>
    %c0_133 = arith.constant 0 : index
    %c3_134 = arith.constant 3 : index
    %c0_135 = arith.constant 0 : index
    %c0_136 = arith.constant 0 : index
    %423 = vector.load %arg3[%c0_133, %c3_134, %c0_135, %c0_136] : memref<2x8x18x18xf32, #tpu.memory_space<vmem>>, vector<2x1x18x18xf32>
    %424 = vector.shape_cast %423 : vector<2x1x18x18xf32> to vector<2x18x18xf32>
    %425 = vector.shape_cast %422 : vector<2x18x18xf32> to vector<2x1x18x18xf32>
    tpu.vector_store %arg3[%c0_133, %c3_134, %c0_135, %c0_136], %425 {strides = array<i32>} : memref<2x8x18x18xf32, #tpu.memory_space<vmem>>, vector<2x1x18x18xf32>,
    %426 = vector.broadcast %418 : f32 to vector<16x16xf32>
    %427 = arith.mulf %75, %426 : vector<16x16xf32>
    %428 = vector.broadcast %420 : f32 to vector<16x16xf32>
    %429 = arith.addf %427, %428 : vector<16x16xf32>
    %cst_137 = arith.constant 0.000000e+00 : f32
    %430 = vector.broadcast %cst_137 : f32 to vector<16x16xf32>
    %431 = arith.maximumf %429, %430 : vector<16x16xf32>
    %c0_138 = arith.constant 0 : index
    %c3_139 = arith.constant 3 : index
    %c1_140 = arith.constant 1 : index
    %c1_141 = arith.constant 1 : index
    %432 = vector.load %arg3[%c0_138, %c3_139, %c1_140, %c1_141] : memref<2x8x18x18xf32, #tpu.memory_space<vmem>>, vector<1x1x16x16xf32>
    %433 = vector.shape_cast %432 : vector<1x1x16x16xf32> to vector<16x16xf32>
    %434 = vector.shape_cast %431 : vector<16x16xf32> to vector<1x1x16x16xf32>
    tpu.vector_store %arg3[%c0_138, %c3_139, %c1_140, %c1_141], %434 {strides = array<i32>} : memref<2x8x18x18xf32, #tpu.memory_space<vmem>>, vector<1x1x16x16xf32>,
    %435 = vector.broadcast %418 : f32 to vector<16x16xf32>
    %436 = arith.mulf %195, %435 : vector<16x16xf32>
    %437 = vector.broadcast %420 : f32 to vector<16x16xf32>
    %438 = arith.addf %436, %437 : vector<16x16xf32>
    %cst_142 = arith.constant 0.000000e+00 : f32
    %439 = vector.broadcast %cst_142 : f32 to vector<16x16xf32>
    %440 = arith.maximumf %438, %439 : vector<16x16xf32>
    %c1_143 = arith.constant 1 : index
    %c3_144 = arith.constant 3 : index
    %c1_145 = arith.constant 1 : index
    %c1_146 = arith.constant 1 : index
    %441 = vector.load %arg3[%c1_143, %c3_144, %c1_145, %c1_146] : memref<2x8x18x18xf32, #tpu.memory_space<vmem>>, vector<1x1x16x16xf32>
    %442 = vector.shape_cast %441 : vector<1x1x16x16xf32> to vector<16x16xf32>
    %443 = vector.shape_cast %440 : vector<16x16xf32> to vector<1x1x16x16xf32>
    tpu.vector_store %arg3[%c1_143, %c3_144, %c1_145, %c1_146], %443 {strides = array<i32>} : memref<2x8x18x18xf32, #tpu.memory_space<vmem>>, vector<1x1x16x16xf32>,
    %444 = arith.mulf %90, %90 : vector<16x16xf32>
    %445 = arith.addf %90, %210 : vector<16x16xf32>
    %446 = arith.mulf %210, %210 : vector<16x16xf32>
    %447 = arith.addf %444, %446 : vector<16x16xf32>
    %448 = vector.shape_cast %445 : vector<16x16xf32> to vector<1x16x16xf32>
    %cst_147 = arith.constant dense<0.000000e+00> : vector<1xf32>
    %449 = vector.multi_reduction <add>, %448, %cst_147 [1, 2] : vector<1x16x16xf32> to vector<1xf32>
    %450 = vector.shape_cast %449 : vector<1xf32> to vector<1x1x1xf32>
    %451 = vector.extract %450[0, 0, 0] : f32 from vector<1x1x1xf32>
    %452 = vector.shape_cast %447 : vector<16x16xf32> to vector<1x16x16xf32>
    %cst_148 = arith.constant dense<0.000000e+00> : vector<1xf32>
    %453 = vector.multi_reduction <add>, %452, %cst_148 [1, 2] : vector<1x16x16xf32> to vector<1xf32>
    %454 = vector.shape_cast %453 : vector<1xf32> to vector<1x1x1xf32>
    %455 = vector.extract %454[0, 0, 0] : f32 from vector<1x1x1xf32>
    %cst_149 = arith.constant 0.00154320989 : f32
    %456 = arith.mulf %451, %cst_149 : f32
    %cst_150 = arith.constant 0.00154320989 : f32
    %457 = arith.mulf %455, %cst_150 : f32
    %458 = arith.mulf %456, %456 : f32
    %459 = arith.subf %457, %458 : f32
    %cst_151 = arith.constant 0.000000e+00 : f32
    %460 = arith.maximumf %459, %cst_151 : f32
    %c28 = arith.constant 28 : index
    %461 = memref.load %arg2[%c28] : memref<48xf32, #tpu.memory_space<smem>>
    %c29 = arith.constant 29 : index
    %462 = memref.load %arg2[%c29] : memref<48xf32, #tpu.memory_space<smem>>
    %cst_152 = arith.constant 9.99999974E-6 : f32
    %463 = arith.addf %460, %cst_152 : f32
    %464 = math.rsqrt %463 : f32
    %465 = arith.mulf %461, %464 : f32
    %466 = arith.mulf %456, %465 : f32
    %467 = arith.subf %462, %466 : f32
    %cst_153 = arith.constant 0.000000e+00 : f32
    %468 = arith.maximumf %467, %cst_153 : f32
    %469 = vector.broadcast %468 : f32 to vector<2x18x18xf32>
    %c0_154 = arith.constant 0 : index
    %c4_155 = arith.constant 4 : index
    %c0_156 = arith.constant 0 : index
    %c0_157 = arith.constant 0 : index
    %470 = vector.load %arg3[%c0_154, %c4_155, %c0_156, %c0_157] : memref<2x8x18x18xf32, #tpu.memory_space<vmem>>, vector<2x1x18x18xf32>
    %471 = vector.shape_cast %470 : vector<2x1x18x18xf32> to vector<2x18x18xf32>
    %472 = vector.shape_cast %469 : vector<2x18x18xf32> to vector<2x1x18x18xf32>
    tpu.vector_store %arg3[%c0_154, %c4_155, %c0_156, %c0_157], %472 {strides = array<i32>} : memref<2x8x18x18xf32, #tpu.memory_space<vmem>>, vector<2x1x18x18xf32>,
    %473 = vector.broadcast %465 : f32 to vector<16x16xf32>
    %474 = arith.mulf %90, %473 : vector<16x16xf32>
    %475 = vector.broadcast %467 : f32 to vector<16x16xf32>
    %476 = arith.addf %474, %475 : vector<16x16xf32>
    %cst_158 = arith.constant 0.000000e+00 : f32
    %477 = vector.broadcast %cst_158 : f32 to vector<16x16xf32>
    %478 = arith.maximumf %476, %477 : vector<16x16xf32>
    %c0_159 = arith.constant 0 : index
    %c4_160 = arith.constant 4 : index
    %c1_161 = arith.constant 1 : index
    %c1_162 = arith.constant 1 : index
    %479 = vector.load %arg3[%c0_159, %c4_160, %c1_161, %c1_162] : memref<2x8x18x18xf32, #tpu.memory_space<vmem>>, vector<1x1x16x16xf32>
    %480 = vector.shape_cast %479 : vector<1x1x16x16xf32> to vector<16x16xf32>
    %481 = vector.shape_cast %478 : vector<16x16xf32> to vector<1x1x16x16xf32>
    tpu.vector_store %arg3[%c0_159, %c4_160, %c1_161, %c1_162], %481 {strides = array<i32>} : memref<2x8x18x18xf32, #tpu.memory_space<vmem>>, vector<1x1x16x16xf32>,
    %482 = vector.broadcast %465 : f32 to vector<16x16xf32>
    %483 = arith.mulf %210, %482 : vector<16x16xf32>
    %484 = vector.broadcast %467 : f32 to vector<16x16xf32>
    %485 = arith.addf %483, %484 : vector<16x16xf32>
    %cst_163 = arith.constant 0.000000e+00 : f32
    %486 = vector.broadcast %cst_163 : f32 to vector<16x16xf32>
    %487 = arith.maximumf %485, %486 : vector<16x16xf32>
    %c1_164 = arith.constant 1 : index
    %c4_165 = arith.constant 4 : index
    %c1_166 = arith.constant 1 : index
    %c1_167 = arith.constant 1 : index
    %488 = vector.load %arg3[%c1_164, %c4_165, %c1_166, %c1_167] : memref<2x8x18x18xf32, #tpu.memory_space<vmem>>, vector<1x1x16x16xf32>
    %489 = vector.shape_cast %488 : vector<1x1x16x16xf32> to vector<16x16xf32>
    %490 = vector.shape_cast %487 : vector<16x16xf32> to vector<1x1x16x16xf32>
    tpu.vector_store %arg3[%c1_164, %c4_165, %c1_166, %c1_167], %490 {strides = array<i32>} : memref<2x8x18x18xf32, #tpu.memory_space<vmem>>, vector<1x1x16x16xf32>,
    %491 = arith.mulf %105, %105 : vector<16x16xf32>
    %492 = arith.addf %105, %225 : vector<16x16xf32>
    %493 = arith.mulf %225, %225 : vector<16x16xf32>
    %494 = arith.addf %491, %493 : vector<16x16xf32>
    %495 = vector.shape_cast %492 : vector<16x16xf32> to vector<1x16x16xf32>
    %cst_168 = arith.constant dense<0.000000e+00> : vector<1xf32>
    %496 = vector.multi_reduction <add>, %495, %cst_168 [1, 2] : vector<1x16x16xf32> to vector<1xf32>
    %497 = vector.shape_cast %496 : vector<1xf32> to vector<1x1x1xf32>
    %498 = vector.extract %497[0, 0, 0] : f32 from vector<1x1x1xf32>
    %499 = vector.shape_cast %494 : vector<16x16xf32> to vector<1x16x16xf32>
    %cst_169 = arith.constant dense<0.000000e+00> : vector<1xf32>
    %500 = vector.multi_reduction <add>, %499, %cst_169 [1, 2] : vector<1x16x16xf32> to vector<1xf32>
    %501 = vector.shape_cast %500 : vector<1xf32> to vector<1x1x1xf32>
    %502 = vector.extract %501[0, 0, 0] : f32 from vector<1x1x1xf32>
    %cst_170 = arith.constant 0.00154320989 : f32
    %503 = arith.mulf %498, %cst_170 : f32
    %cst_171 = arith.constant 0.00154320989 : f32
    %504 = arith.mulf %502, %cst_171 : f32
    %505 = arith.mulf %503, %503 : f32
    %506 = arith.subf %504, %505 : f32
    %cst_172 = arith.constant 0.000000e+00 : f32
    %507 = arith.maximumf %506, %cst_172 : f32
    %c34 = arith.constant 34 : index
    %508 = memref.load %arg2[%c34] : memref<48xf32, #tpu.memory_space<smem>>
    %c35 = arith.constant 35 : index
    %509 = memref.load %arg2[%c35] : memref<48xf32, #tpu.memory_space<smem>>
    %cst_173 = arith.constant 9.99999974E-6 : f32
    %510 = arith.addf %507, %cst_173 : f32
    %511 = math.rsqrt %510 : f32
    %512 = arith.mulf %508, %511 : f32
    %513 = arith.mulf %503, %512 : f32
    %514 = arith.subf %509, %513 : f32
    %cst_174 = arith.constant 0.000000e+00 : f32
    %515 = arith.maximumf %514, %cst_174 : f32
    %516 = vector.broadcast %515 : f32 to vector<2x18x18xf32>
    %c0_175 = arith.constant 0 : index
    %c5_176 = arith.constant 5 : index
    %c0_177 = arith.constant 0 : index
    %c0_178 = arith.constant 0 : index
    %517 = vector.load %arg3[%c0_175, %c5_176, %c0_177, %c0_178] : memref<2x8x18x18xf32, #tpu.memory_space<vmem>>, vector<2x1x18x18xf32>
    %518 = vector.shape_cast %517 : vector<2x1x18x18xf32> to vector<2x18x18xf32>
    %519 = vector.shape_cast %516 : vector<2x18x18xf32> to vector<2x1x18x18xf32>
    tpu.vector_store %arg3[%c0_175, %c5_176, %c0_177, %c0_178], %519 {strides = array<i32>} : memref<2x8x18x18xf32, #tpu.memory_space<vmem>>, vector<2x1x18x18xf32>,
    %520 = vector.broadcast %512 : f32 to vector<16x16xf32>
    %521 = arith.mulf %105, %520 : vector<16x16xf32>
    %522 = vector.broadcast %514 : f32 to vector<16x16xf32>
    %523 = arith.addf %521, %522 : vector<16x16xf32>
    %cst_179 = arith.constant 0.000000e+00 : f32
    %524 = vector.broadcast %cst_179 : f32 to vector<16x16xf32>
    %525 = arith.maximumf %523, %524 : vector<16x16xf32>
    %c0_180 = arith.constant 0 : index
    %c5_181 = arith.constant 5 : index
    %c1_182 = arith.constant 1 : index
    %c1_183 = arith.constant 1 : index
    %526 = vector.load %arg3[%c0_180, %c5_181, %c1_182, %c1_183] : memref<2x8x18x18xf32, #tpu.memory_space<vmem>>, vector<1x1x16x16xf32>
    %527 = vector.shape_cast %526 : vector<1x1x16x16xf32> to vector<16x16xf32>
    %528 = vector.shape_cast %525 : vector<16x16xf32> to vector<1x1x16x16xf32>
    tpu.vector_store %arg3[%c0_180, %c5_181, %c1_182, %c1_183], %528 {strides = array<i32>} : memref<2x8x18x18xf32, #tpu.memory_space<vmem>>, vector<1x1x16x16xf32>,
    %529 = vector.broadcast %512 : f32 to vector<16x16xf32>
    %530 = arith.mulf %225, %529 : vector<16x16xf32>
    %531 = vector.broadcast %514 : f32 to vector<16x16xf32>
    %532 = arith.addf %530, %531 : vector<16x16xf32>
    %cst_184 = arith.constant 0.000000e+00 : f32
    %533 = vector.broadcast %cst_184 : f32 to vector<16x16xf32>
    %534 = arith.maximumf %532, %533 : vector<16x16xf32>
    %c1_185 = arith.constant 1 : index
    %c5_186 = arith.constant 5 : index
    %c1_187 = arith.constant 1 : index
    %c1_188 = arith.constant 1 : index
    %535 = vector.load %arg3[%c1_185, %c5_186, %c1_187, %c1_188] : memref<2x8x18x18xf32, #tpu.memory_space<vmem>>, vector<1x1x16x16xf32>
    %536 = vector.shape_cast %535 : vector<1x1x16x16xf32> to vector<16x16xf32>
    %537 = vector.shape_cast %534 : vector<16x16xf32> to vector<1x1x16x16xf32>
    tpu.vector_store %arg3[%c1_185, %c5_186, %c1_187, %c1_188], %537 {strides = array<i32>} : memref<2x8x18x18xf32, #tpu.memory_space<vmem>>, vector<1x1x16x16xf32>,
    %538 = arith.mulf %120, %120 : vector<16x16xf32>
    %539 = arith.addf %120, %240 : vector<16x16xf32>
    %540 = arith.mulf %240, %240 : vector<16x16xf32>
    %541 = arith.addf %538, %540 : vector<16x16xf32>
    %542 = vector.shape_cast %539 : vector<16x16xf32> to vector<1x16x16xf32>
    %cst_189 = arith.constant dense<0.000000e+00> : vector<1xf32>
    %543 = vector.multi_reduction <add>, %542, %cst_189 [1, 2] : vector<1x16x16xf32> to vector<1xf32>
    %544 = vector.shape_cast %543 : vector<1xf32> to vector<1x1x1xf32>
    %545 = vector.extract %544[0, 0, 0] : f32 from vector<1x1x1xf32>
    %546 = vector.shape_cast %541 : vector<16x16xf32> to vector<1x16x16xf32>
    %cst_190 = arith.constant dense<0.000000e+00> : vector<1xf32>
    %547 = vector.multi_reduction <add>, %546, %cst_190 [1, 2] : vector<1x16x16xf32> to vector<1xf32>
    %548 = vector.shape_cast %547 : vector<1xf32> to vector<1x1x1xf32>
    %549 = vector.extract %548[0, 0, 0] : f32 from vector<1x1x1xf32>
    %cst_191 = arith.constant 0.00154320989 : f32
    %550 = arith.mulf %545, %cst_191 : f32
    %cst_192 = arith.constant 0.00154320989 : f32
    %551 = arith.mulf %549, %cst_192 : f32
    %552 = arith.mulf %550, %550 : f32
    %553 = arith.subf %551, %552 : f32
    %cst_193 = arith.constant 0.000000e+00 : f32
    %554 = arith.maximumf %553, %cst_193 : f32
    %c40 = arith.constant 40 : index
    %555 = memref.load %arg2[%c40] : memref<48xf32, #tpu.memory_space<smem>>
    %c41 = arith.constant 41 : index
    %556 = memref.load %arg2[%c41] : memref<48xf32, #tpu.memory_space<smem>>
    %cst_194 = arith.constant 9.99999974E-6 : f32
    %557 = arith.addf %554, %cst_194 : f32
    %558 = math.rsqrt %557 : f32
    %559 = arith.mulf %555, %558 : f32
    %560 = arith.mulf %550, %559 : f32
    %561 = arith.subf %556, %560 : f32
    %cst_195 = arith.constant 0.000000e+00 : f32
    %562 = arith.maximumf %561, %cst_195 : f32
    %563 = vector.broadcast %562 : f32 to vector<2x18x18xf32>
    %c0_196 = arith.constant 0 : index
    %c6_197 = arith.constant 6 : index
    %c0_198 = arith.constant 0 : index
    %c0_199 = arith.constant 0 : index
    %564 = vector.load %arg3[%c0_196, %c6_197, %c0_198, %c0_199] : memref<2x8x18x18xf32, #tpu.memory_space<vmem>>, vector<2x1x18x18xf32>
    %565 = vector.shape_cast %564 : vector<2x1x18x18xf32> to vector<2x18x18xf32>
    %566 = vector.shape_cast %563 : vector<2x18x18xf32> to vector<2x1x18x18xf32>
    tpu.vector_store %arg3[%c0_196, %c6_197, %c0_198, %c0_199], %566 {strides = array<i32>} : memref<2x8x18x18xf32, #tpu.memory_space<vmem>>, vector<2x1x18x18xf32>,
    %567 = vector.broadcast %559 : f32 to vector<16x16xf32>
    %568 = arith.mulf %120, %567 : vector<16x16xf32>
    %569 = vector.broadcast %561 : f32 to vector<16x16xf32>
    %570 = arith.addf %568, %569 : vector<16x16xf32>
    %cst_200 = arith.constant 0.000000e+00 : f32
    %571 = vector.broadcast %cst_200 : f32 to vector<16x16xf32>
    %572 = arith.maximumf %570, %571 : vector<16x16xf32>
    %c0_201 = arith.constant 0 : index
    %c6_202 = arith.constant 6 : index
    %c1_203 = arith.constant 1 : index
    %c1_204 = arith.constant 1 : index
    %573 = vector.load %arg3[%c0_201, %c6_202, %c1_203, %c1_204] : memref<2x8x18x18xf32, #tpu.memory_space<vmem>>, vector<1x1x16x16xf32>
    %574 = vector.shape_cast %573 : vector<1x1x16x16xf32> to vector<16x16xf32>
    %575 = vector.shape_cast %572 : vector<16x16xf32> to vector<1x1x16x16xf32>
    tpu.vector_store %arg3[%c0_201, %c6_202, %c1_203, %c1_204], %575 {strides = array<i32>} : memref<2x8x18x18xf32, #tpu.memory_space<vmem>>, vector<1x1x16x16xf32>,
    %576 = vector.broadcast %559 : f32 to vector<16x16xf32>
    %577 = arith.mulf %240, %576 : vector<16x16xf32>
    %578 = vector.broadcast %561 : f32 to vector<16x16xf32>
    %579 = arith.addf %577, %578 : vector<16x16xf32>
    %cst_205 = arith.constant 0.000000e+00 : f32
    %580 = vector.broadcast %cst_205 : f32 to vector<16x16xf32>
    %581 = arith.maximumf %579, %580 : vector<16x16xf32>
    %c1_206 = arith.constant 1 : index
    %c6_207 = arith.constant 6 : index
    %c1_208 = arith.constant 1 : index
    %c1_209 = arith.constant 1 : index
    %582 = vector.load %arg3[%c1_206, %c6_207, %c1_208, %c1_209] : memref<2x8x18x18xf32, #tpu.memory_space<vmem>>, vector<1x1x16x16xf32>
    %583 = vector.shape_cast %582 : vector<1x1x16x16xf32> to vector<16x16xf32>
    %584 = vector.shape_cast %581 : vector<16x16xf32> to vector<1x1x16x16xf32>
    tpu.vector_store %arg3[%c1_206, %c6_207, %c1_208, %c1_209], %584 {strides = array<i32>} : memref<2x8x18x18xf32, #tpu.memory_space<vmem>>, vector<1x1x16x16xf32>,
    %585 = arith.mulf %135, %135 : vector<16x16xf32>
    %586 = arith.addf %135, %255 : vector<16x16xf32>
    %587 = arith.mulf %255, %255 : vector<16x16xf32>
    %588 = arith.addf %585, %587 : vector<16x16xf32>
    %589 = vector.shape_cast %586 : vector<16x16xf32> to vector<1x16x16xf32>
    %cst_210 = arith.constant dense<0.000000e+00> : vector<1xf32>
    %590 = vector.multi_reduction <add>, %589, %cst_210 [1, 2] : vector<1x16x16xf32> to vector<1xf32>
    %591 = vector.shape_cast %590 : vector<1xf32> to vector<1x1x1xf32>
    %592 = vector.extract %591[0, 0, 0] : f32 from vector<1x1x1xf32>
    %593 = vector.shape_cast %588 : vector<16x16xf32> to vector<1x16x16xf32>
    %cst_211 = arith.constant dense<0.000000e+00> : vector<1xf32>
    %594 = vector.multi_reduction <add>, %593, %cst_211 [1, 2] : vector<1x16x16xf32> to vector<1xf32>
    %595 = vector.shape_cast %594 : vector<1xf32> to vector<1x1x1xf32>
    %596 = vector.extract %595[0, 0, 0] : f32 from vector<1x1x1xf32>
    %cst_212 = arith.constant 0.00154320989 : f32
    %597 = arith.mulf %592, %cst_212 : f32
    %cst_213 = arith.constant 0.00154320989 : f32
    %598 = arith.mulf %596, %cst_213 : f32
    %599 = arith.mulf %597, %597 : f32
    %600 = arith.subf %598, %599 : f32
    %cst_214 = arith.constant 0.000000e+00 : f32
    %601 = arith.maximumf %600, %cst_214 : f32
    %c46 = arith.constant 46 : index
    %602 = memref.load %arg2[%c46] : memref<48xf32, #tpu.memory_space<smem>>
    %c47 = arith.constant 47 : index
    %603 = memref.load %arg2[%c47] : memref<48xf32, #tpu.memory_space<smem>>
    %cst_215 = arith.constant 9.99999974E-6 : f32
    %604 = arith.addf %601, %cst_215 : f32
    %605 = math.rsqrt %604 : f32
    %606 = arith.mulf %602, %605 : f32
    %607 = arith.mulf %597, %606 : f32
    %608 = arith.subf %603, %607 : f32
    %cst_216 = arith.constant 0.000000e+00 : f32
    %609 = arith.maximumf %608, %cst_216 : f32
    %610 = vector.broadcast %609 : f32 to vector<2x18x18xf32>
    %c0_217 = arith.constant 0 : index
    %c7_218 = arith.constant 7 : index
    %c0_219 = arith.constant 0 : index
    %c0_220 = arith.constant 0 : index
    %611 = vector.load %arg3[%c0_217, %c7_218, %c0_219, %c0_220] : memref<2x8x18x18xf32, #tpu.memory_space<vmem>>, vector<2x1x18x18xf32>
    %612 = vector.shape_cast %611 : vector<2x1x18x18xf32> to vector<2x18x18xf32>
    %613 = vector.shape_cast %610 : vector<2x18x18xf32> to vector<2x1x18x18xf32>
    tpu.vector_store %arg3[%c0_217, %c7_218, %c0_219, %c0_220], %613 {strides = array<i32>} : memref<2x8x18x18xf32, #tpu.memory_space<vmem>>, vector<2x1x18x18xf32>,
    %614 = vector.broadcast %606 : f32 to vector<16x16xf32>
    %615 = arith.mulf %135, %614 : vector<16x16xf32>
    %616 = vector.broadcast %608 : f32 to vector<16x16xf32>
    %617 = arith.addf %615, %616 : vector<16x16xf32>
    %cst_221 = arith.constant 0.000000e+00 : f32
    %618 = vector.broadcast %cst_221 : f32 to vector<16x16xf32>
    %619 = arith.maximumf %617, %618 : vector<16x16xf32>
    %c0_222 = arith.constant 0 : index
    %c7_223 = arith.constant 7 : index
    %c1_224 = arith.constant 1 : index
    %c1_225 = arith.constant 1 : index
    %620 = vector.load %arg3[%c0_222, %c7_223, %c1_224, %c1_225] : memref<2x8x18x18xf32, #tpu.memory_space<vmem>>, vector<1x1x16x16xf32>
    %621 = vector.shape_cast %620 : vector<1x1x16x16xf32> to vector<16x16xf32>
    %622 = vector.shape_cast %619 : vector<16x16xf32> to vector<1x1x16x16xf32>
    tpu.vector_store %arg3[%c0_222, %c7_223, %c1_224, %c1_225], %622 {strides = array<i32>} : memref<2x8x18x18xf32, #tpu.memory_space<vmem>>, vector<1x1x16x16xf32>,
    %623 = vector.broadcast %606 : f32 to vector<16x16xf32>
    %624 = arith.mulf %255, %623 : vector<16x16xf32>
    %625 = vector.broadcast %608 : f32 to vector<16x16xf32>
    %626 = arith.addf %624, %625 : vector<16x16xf32>
    %cst_226 = arith.constant 0.000000e+00 : f32
    %627 = vector.broadcast %cst_226 : f32 to vector<16x16xf32>
    %628 = arith.maximumf %626, %627 : vector<16x16xf32>
    %c1_227 = arith.constant 1 : index
    %c7_228 = arith.constant 7 : index
    %c1_229 = arith.constant 1 : index
    %c1_230 = arith.constant 1 : index
    %629 = vector.load %arg3[%c1_227, %c7_228, %c1_229, %c1_230] : memref<2x8x18x18xf32, #tpu.memory_space<vmem>>, vector<1x1x16x16xf32>
    %630 = vector.shape_cast %629 : vector<1x1x16x16xf32> to vector<16x16xf32>
    %631 = vector.shape_cast %628 : vector<16x16xf32> to vector<1x1x16x16xf32>
    tpu.vector_store %arg3[%c1_227, %c7_228, %c1_229, %c1_230], %631 {strides = array<i32>} : memref<2x8x18x18xf32, #tpu.memory_space<vmem>>, vector<1x1x16x16xf32>,
    return
  }
  func.func @transform_0(%arg0: i32) -> (i32, i32, i32, i32) {
    %c0_i32 = arith.constant 0 : i32
    %c0_i32_0 = arith.constant 0 : i32
    %c0_i32_1 = arith.constant 0 : i32
    %c0_i32_2 = arith.constant 0 : i32
    %c0_i32_3 = arith.constant 0 : i32
    return %c0_i32, %c0_i32_0, %c0_i32_1, %c0_i32_2 : i32, i32, i32, i32
  }
  func.func @transform_1(%arg0: i32) -> i32 {
    %c0_i32 = arith.constant 0 : i32
    %c0_i32_0 = arith.constant 0 : i32
    return %c0_i32 : i32
  }
  func.func @transform_2(%arg0: i32) -> (i32, i32, i32, i32) {
    %c0_i32 = arith.constant 0 : i32
    %c0_i32_0 = arith.constant 0 : i32
    %c0_i32_1 = arith.constant 0 : i32
    %c0_i32_2 = arith.constant 0 : i32
    %c0_i32_3 = arith.constant 0 : i32
    return %c0_i32, %c0_i32_0, %c0_i32_1, %c0_i32_2 : i32, i32, i32, i32
  }
}

</mosaic_0001>

<bundles_post_ra>
// kernel: warmupblock_forward.1
= control target key start
LH: loop header
LB: loop body
LE: loop exit
PB: predicated region body
PF: predicated region fallthrough
CT: control target
= control target key end

     0   :  { %7 = vsyncpa [#allocation3], 0  ;;  %s2315_s0 = inlined_call_operand.hbm [shape: f32[2,4,16,16], index: 0, kind: input, shape index: {}]   ;;  %s2316_s1 = inlined_call_operand.vmem [shape: f32[48], index: 1, kind: input, shape index: {}]   ;;  %s2317_s2 = inlined_call_operand.vmem [shape: f32[2,8,18,18], index: 2, kind: output, shape index: {}]  }
   0x1   :  { %s13_s11 = sshll.u32 %s2315_s0, 4  ;;  %s14_s11 = int_to_ptr.hbm [resolvable:$true] %s13_s11 }
   0x2   :  { %8 = vsyncpa [#allocation4], 0  ;;  %s1381_s12 = smov [#allocation2]   ;;  %s27_s16 = sshll.u32 %s2316_s1, 4  ;;  %s28_s16 = int_to_ptr.vmem [resolvable:$true] %s27_s16 }
   0x3   :  { %s15_s13 = sshll.u32 %s1381_s12, 4  ;;  %s1382_s17 = smov 128   ;;  %s16_s13 = int_to_ptr.vmem [resolvable:$true] %s15_s13 }
   0x4   :  { %s1383_s18 = smov 8   ;;  %s1384_s19 = smov [#allocation5]  }
   0x5   :  { %21 = dma.hbm_to_vmem [thread:$0]  %s14_s11, 2048, %s16_s13, [#allocation3], %s1382_s17, %s1382_s17, %s1383_s18  }
   0x6   :  { %30 = dma.vmem_to_smem %s28_s16, 16, %s1384_s19, [#allocation4]  }
   0x7   :  { %1377 = dma.done.wait [#allocation3], 2048  }
   0x8   :  { %1378 = vsyncadd [#allocation3], 4294965248 }
   0x9   :  { %1379 = dma.done.wait [#allocation4], 16  }
   0xa   :  { %1380 = vsyncadd [#allocation4], 4294967280 }
   0xb   :  { %39 = sfence }
   0xc   :  { %s63_s0 = sld [smem:[#allocation5]]  ;;  %v1410_v0 = vld [vmem:[#allocation2] sm:$0xff]  ;;  %v1412_v1 = vld [vmem:[#allocation2 + $0x8] sm:$0xff]  ;;  %v1418_v3 = vld [vmem:[#allocation2 + $0x10] sm:$0xff]  ;;  %vm359_vm0 = vcmask 130048   ;;  %s1385_s19 = smov 0.0  }
   0xd   :  { %s1152_s20 = sld [smem:[#allocation5 + $0x1]]  ;;  %v1414_v2 = vld [vmem:[#allocation2 + $0x40] sm:$0xff]  ;;  %v1420_v4 = vld [vmem:[#allocation2 + $0x18] sm:$0xff]  ;;  %v1422_v5 = vld [vmem:[#allocation2 + $0x48] sm:$0xff]  ;;  %vm409_vm4 = vcmask 146432   ;;  %vm412_vm5 = vcmask 140288  }
   0xe   :  { %s1153_s21 = sld [smem:[#allocation5 + $0x2]]  ;;  %v1426_v6 = vld [vmem:[#allocation2 + $0x20] sm:$0xff]  ;;  %v1428_v7 = vld [vmem:[#allocation2 + $0x28] sm:$0xff]  ;;  %v1430_v8 = vld [vmem:[#allocation2 + $0x50] sm:$0xff]  ;;  %vm433_vm9 = vcmask 138248  }
   0xf   :  { %s1408_s22 = sld [smem:[#allocation5 + $0x3]]  ;;  %v1432_v10 = vld [vmem:[#allocation2 + $0x30] sm:$0xff]  ;;  %v1434_v11 = vld [vmem:[#allocation2 + $0x38] sm:$0xff]  ;;  %v1441_v17 = vld [vmem:[#allocation2 + $0x60] sm:$0xff] }
  0x10   :  { %s1416_s1 = sld [smem:[#allocation5 + $0x6]]  ;;  %v1439_v16 = vld [vmem:[#allocation2 + $0x58] sm:$0xff]  ;;  %v1443_v18 = vld [vmem:[#allocation2 + $0x68] sm:$0xff]  ;;  %v1450_v23 = vld [vmem:[#allocation2 + $0x70] sm:$0xff] }
  0x11   :  { %s1424_s23 = sld [smem:[#allocation5 + $0x7]]  ;;  %v1452_v24 = vld [vmem:[#allocation2 + $0x78] sm:$0xff] }
  0x12   :  { %v64_v9 = vstv %s63_s0  ;;  %s1448_s24 = sld [smem:[#allocation5 + $0x8]] }
  0x13   :  { %v65_v12 = vmul.f32 %v64_v9, %v1410_v0  ;;  %v66_v13 = vmul.f32 %v64_v9, %v1412_v1  ;;  %v68_v14 = vstv %s1152_s20  ;;  %v239_v15 = vmul.f32 %v64_v9, %v1414_v2  ;;  %s1458_s25 = sld [smem:[#allocation5 + $0x9]] }
  0x14   :  { %v69_v19 = vmul.f32 %v68_v14, %v1418_v3  ;;  %v70_v20 = vmul.f32 %v68_v14, %v1420_v4  ;;  %v74_v21 = vstv %s1153_s21  ;;  %v240_v22 = vmul.f32 %v64_v9, %v1422_v5  ;;  %s1159_s26 = sld [smem:[#allocation5 + $0xc]] }
  0x15   :  { %v75_v25 = vmul.f32 %v74_v21, %v1426_v6  ;;  %v76_v26 = vmul.f32 %v74_v21, %v1428_v7  ;;  %v80_v27 = vstv %s1408_s22  ;;  %v241_v28 = vmul.f32 %v68_v14, %v1430_v8  ;;  %s1160_s27 = sld [smem:[#allocation5 + $0xd]] }
  0x16   :  { %v71_v29 = vadd.f32 %v69_v19, %v65_v12  ;;  %v72_v30 = vadd.f32 %v70_v20, %v66_v13  ;;  %v81_v31 = vmul.f32 %v80_v27, %v1432_v10  ;;  %v82_v32 = vmul.f32 %v80_v27, %v1434_v11  ;;  %s1161_s28 = sld [smem:[#allocation5 + $0xe]] }
  0x17   :  { %v242_v33 = vmul.f32 %v68_v14, %v1439_v16  ;;  %v243_v34 = vadd.f32 %v241_v28, %v239_v15  ;;  %v245_v35 = vmul.f32 %v74_v21, %v1441_v17  ;;  %v246_v36 = vmul.f32 %v74_v21, %v1443_v18  ;;  %s1162_s29 = sld [smem:[#allocation5 + $0xf]] }
  0x18   :  { %v77_v37 = vadd.f32 %v75_v25, %v71_v29  ;;  %v78_v38 = vadd.f32 %v76_v26, %v72_v30  ;;  %v249_v39 = vmul.f32 %v80_v27, %v1450_v23  ;;  %v250_v40 = vmul.f32 %v80_v27, %v1452_v24  ;;  %s1167_s30 = sld [smem:[#allocation5 + $0x18]] }
  0x19   :  { %v244_v41 = vadd.f32 %v242_v33, %v240_v22  ;;  %v247_v42 = vadd.f32 %v245_v35, %v243_v34  ;;  %v86_v43 = vstv %s1416_s1  ;;  %v90_v44 = vstv %s1424_s23  ;;  %s1168_s3 = sld [smem:[#allocation5 + $0x19]] }
  0x1a   :  { %v1469_v45 = vadd.f32 %v81_v31, %v77_v37  ;;  %v1471_v46 = vadd.f32 %v82_v32, %v78_v38  ;;  %v87_v47 = vmul.f32 %v86_v43, %v1410_v0  ;;  %v88_v48 = vmul.f32 %v86_v43, %v1412_v1  ;;  %s1169_s4 = sld [smem:[#allocation5 + $0x1a]] }
  0x1b   :  { %v248_v49 = vadd.f32 %v246_v36, %v244_v41  ;;  %v1475_v50 = vadd.f32 %v249_v39, %v247_v42  ;;  %v91_v51 = vmul.f32 %v90_v44, %v1418_v3  ;;  %v92_v52 = vmul.f32 %v90_v44, %v1420_v4  ;;  %s1170_s5 = sld [smem:[#allocation5 + $0x1b]] }
  0x1c   :  { %v351_v53 = vmul.f32 %v1469_v45, %v1469_v45  ;;  %v352_v54 = vmul.f32 %v1471_v46, %v1471_v46  ;;  %v96_v55 = vstv %s1448_s24  ;;  %v102_v59 = vstv %s1458_s25  ;;  %s1577_s7 = sld [smem:[#allocation5 + $0x12]] }
  0x1d   :  { %v1484_v56 = vadd.f32 %v250_v40, %v248_v49  ;;  %v353_v57 = vadd.f32 %v1475_v50, %v1469_v45  ;;  %v355_v58 = vmul.f32 %v1475_v50, %v1475_v50  ;;  %v93_v60 = vadd.f32 %v91_v51, %v87_v47  ;;  %s1579_s8 = sld [smem:[#allocation5 + $0x13]] }
  0x1e   :  { %v94_v61 = vadd.f32 %v92_v52, %v88_v48  ;;  %v97_v62 = vmul.f32 %v96_v55, %v1426_v6  ;;  %v98_v63 = vmul.f32 %v96_v55, %v1428_v7  ;;  %v103_v14 = vmul.f32 %v102_v59, %v1432_v10  ;;  %s1584_s9 = sld [smem:[#allocation5 + $0x14]] }
  0x1f   :  { %v354_v9 = vadd.f32 %v1484_v56, %v1471_v46  ;;  %v360_v12 = vsel %vm359_vm0, %v353_v57, 0.0  ;;  %v356_v13 = vmul.f32 %v1484_v56, %v1484_v56  ;;  %v253_v15 = vmul.f32 %v86_v43, %v1414_v2  ;;  %s1592_s11 = sld [smem:[#allocation5 + $0x15]] }
  0x20   :  { %v357_v20 = vadd.f32 %v355_v58, %v351_v53  ;;  %v254_v22 = vmul.f32 %v86_v43, %v1422_v5  ;;  %v99_v26 = vadd.f32 %v97_v62, %v93_v60  ;;  %v100_v27 = vadd.f32 %v98_v63, %v94_v61  ;;  %s1608_s15 = sld [smem:[#allocation5 + $0x1e]] }
  0x21   :  { %v361_v19 = vsel %vm359_vm0, %v354_v9, 0.0  ;;  %v358_v21 = vadd.f32 %v356_v13, %v352_v54  ;;  %v255_v28 = vmul.f32 %v90_v44, %v1430_v8  ;;  %v104_v29 = vmul.f32 %v102_v59, %v1434_v11  ;;  %s1616_s16 = sld [smem:[#allocation5 + $0x1f]] }
  0x22   :  { %v362_v25 = vadd.f32 %v361_v19, %v360_v12  ;;  %v256_v30 = vmul.f32 %v90_v44, %v1439_v16  ;;  %v259_v31 = vmul.f32 %v96_v55, %v1441_v17  ;;  %v260_v32 = vmul.f32 %v96_v55, %v1443_v18  ;;  %s1624_s18 = sld [smem:[#allocation5 + $0x20]] }
  0x23   :  { %v257_v33 = vadd.f32 %v255_v28, %v253_v15  ;;  %v263_v34 = vmul.f32 %v102_v59, %v1450_v23  ;;  %v372_v35 = vsel %vm359_vm0, %v357_v20, 0.0  ;;  %v373_v36 = vsel %vm359_vm0, %v358_v21, 0.0  ;;  %s1633_s20 = sld [smem:[#allocation5 + $0x21]] }
  0x24   :  { %363 = vadd.xlane.f32.xlu0 %v362_v25  ;;  %v258_v37 = vadd.f32 %v256_v30, %v254_v22  ;;  %v264_v38 = vmul.f32 %v102_v59, %v1452_v24  ;;  %v1511_v39 = vadd.f32 %v103_v14, %v99_v26  ;;  %v1513_v41 = vadd.f32 %v104_v29, %v100_v27  ;;  %s1691_s22 = sld [smem:[#allocation5 + $0x2a]] }
  0x25   :  { %v261_v40 = vadd.f32 %v259_v31, %v257_v33  ;;  %v374_v43 = vadd.f32 %v373_v36, %v372_v35  ;;  %v108_v9 = vstv %s1159_s26  ;;  %v112_v12 = vstv %s1160_s27  ;;  %s1701_s1 = sld [smem:[#allocation5 + $0x2b]] }
  0x26   :  { %v262_v42 = vadd.f32 %v260_v32, %v258_v37  ;;  %v453_v48 = vmul.f32 %v1511_v39, %v1511_v39  ;;  %v454_v49 = vmul.f32 %v1513_v41, %v1513_v41  ;;  %v118_v13 = vstv %s1161_s28  ;;  %s1709_s23 = sld [smem:[#allocation5 + $0x2c]] }
  0x27   :  { %v1515_v44 = vadd.f32 %v263_v34, %v261_v40  ;;  %v124_v14 = vstv %s1162_s29  ;;  %v109_v15 = vmul.f32 %v108_v9, %v1410_v0  ;;  %v110_v19 = vmul.f32 %v108_v9, %v1412_v1  ;;  %s1715_s24 = sld [smem:[#allocation5 + $0x2d]] }
  0x28   :  { %v1517_v47 = vadd.f32 %v264_v38, %v262_v42  ;;  %v113_v20 = vmul.f32 %v112_v12, %v1418_v3  ;;  %v114_v21 = vmul.f32 %v112_v12, %v1420_v4  ;;  %v119_v22 = vmul.f32 %v118_v13, %v1426_v6  ;;  %s1747_s25 = sld [smem:[#allocation5 + $0x24]] }
  0x29   :  { %v455_v51 = vadd.f32 %v1515_v44, %v1511_v39  ;;  %v457_v52 = vmul.f32 %v1515_v44, %v1515_v44  ;;  %v120_v25 = vmul.f32 %v118_v13, %v1428_v7  ;;  %v125_v26 = vmul.f32 %v124_v14, %v1432_v10  ;;  %s1753_s26 = sld [smem:[#allocation5 + $0x25]] }
  0x2a   :  { %v456_v53 = vadd.f32 %v1517_v47, %v1513_v41  ;;  %v458_v54 = vmul.f32 %v1517_v47, %v1517_v47  ;;  %v126_v27 = vmul.f32 %v124_v14, %v1434_v11  ;;  %v115_v28 = vadd.f32 %v113_v20, %v109_v15  ;;  %s1758_s27 = sld [smem:[#allocation5 + $0x26]] }
  0x2b   :  { %v461_v55 = vsel %vm359_vm0, %v455_v51, 0.0  ;;  %v459_v58 = vadd.f32 %v457_v52, %v453_v48  ;;  %v116_v29 = vadd.f32 %v114_v21, %v110_v19  ;;  %v267_v30 = vmul.f32 %v108_v9, %v1414_v2  ;;  %s1765_s28 = sld [smem:[#allocation5 + $0x27]] }
  0x2c   :  { %375 = vadd.xlane.f32.xlu0 %v374_v43  ;;  %v462_v57 = vsel %vm359_vm0, %v456_v53, 0.0  ;;  %v460_v59 = vadd.f32 %v458_v54, %v454_v49  ;;  %v268_v31 = vmul.f32 %v108_v9, %v1422_v5  ;;  %v269_v32 = vmul.f32 %v112_v12, %v1430_v8  ;;  %s1183_s29 = sld [smem:[#allocation5 + $0x4]] }
  0x2d   :  { %v463_v60 = vadd.f32 %v462_v57, %v461_v55  ;;  %v473_v61 = vsel %vm359_vm0, %v459_v58, 0.0  ;;  %v270_v33 = vmul.f32 %v112_v12, %v1439_v16  ;;  %v273_v34 = vmul.f32 %v118_v13, %v1441_v17 }
  0x2e   :  { %v474_v62 = vsel %vm359_vm0, %v460_v59, 0.0  ;;  %v274_v35 = vmul.f32 %v118_v13, %v1443_v18  ;;  %v121_v36 = vadd.f32 %v119_v22, %v115_v28  ;;  %v122_v37 = vadd.f32 %v120_v25, %v116_v29 }
  0x2f   :  { %464 = vadd.xlane.f32.xlu1 %v463_v60  ;;  %v475_v63 = vadd.f32 %v474_v62, %v473_v61  ;;  %v271_v38 = vadd.f32 %v269_v32, %v267_v30  ;;  %v272_v40 = vadd.f32 %v270_v33, %v268_v31  ;;  %v277_v42 = vmul.f32 %v124_v14, %v1450_v23 }
  0x30   :  { %v278_v43 = vmul.f32 %v124_v14, %v1452_v24  ;;  %v1551_v48 = vadd.f32 %v125_v26, %v121_v36  ;;  %v1553_v49 = vadd.f32 %v126_v27, %v122_v37 }
  0x31   :  { %v275_v51 = vadd.f32 %v273_v34, %v271_v38  ;;  %v276_v52 = vadd.f32 %v274_v35, %v272_v40 }
  0x32   :  { %v552_v55 = vmul.f32 %v1551_v48, %v1551_v48  ;;  %v553_v58 = vmul.f32 %v1553_v49, %v1553_v49 }
  0x33   :  { %v1555_v53 = vadd.f32 %v277_v42, %v275_v51  ;;  %v1557_v54 = vadd.f32 %v278_v43, %v276_v52 }
  0x35   :  { %v554_v60 = vadd.f32 %v1555_v53, %v1551_v48  ;;  %v555_v61 = vadd.f32 %v1557_v54, %v1553_v49  ;;  %v556_v62 = vmul.f32 %v1555_v53, %v1555_v53 }
  0x37   :  { %476 = vadd.xlane.f32.xlu1 %v475_v63  ;;  %v557_v63 = vmul.f32 %v1557_v54, %v1557_v54  ;;  %v560_v12 = vsel %vm359_vm0, %v554_v60, 0.0  ;;  %v561_v13 = vsel %vm359_vm0, %v555_v61, 0.0  ;;  %v558_v14 = vadd.f32 %v556_v62, %v552_v55 }
  0x38   :  { %v562_v15 = vadd.f32 %v561_v13, %v560_v12  ;;  %v152_v61 = vstv %s1167_s30  ;;  %v156_v62 = vstv %s1168_s3  ;;  %s1184_s30 = sld [smem:[#allocation5 + $0x5]] }
  0x39   :  { %v559_v19 = vadd.f32 %v557_v63, %v553_v58  ;;  %v572_v22 = vsel %vm359_vm0, %v558_v14, 0.0  ;;  %v153_v63 = vmul.f32 %v152_v61, %v1410_v0  ;;  %v157_v12 = vmul.f32 %v156_v62, %v1418_v3 }
  0x3a   :  { %563 = vadd.xlane.f32.xlu2 %v562_v15  ;;  %v158_v13 = vmul.f32 %v156_v62, %v1420_v4  ;;  %v162_v14 = vstv %s1169_s4  ;;  %v168_v15 = vstv %s1170_s5 }
  0x3b   :  { %v573_v25 = vsel %vm359_vm0, %v559_v19, 0.0  ;;  %v295_v19 = vmul.f32 %v152_v61, %v1414_v2 }
  0x3c   :  { %v574_v29 = vadd.f32 %v573_v25, %v572_v22  ;;  %v163_v25 = vmul.f32 %v162_v14, %v1426_v6 }
  0x42   :  { %575 = vadd.xlane.f32.xlu2 %v574_v29  ;;  %v297_v29 = vmul.f32 %v156_v62, %v1430_v8 }
  0x97   :  { %v364_v57 = vpop.xlane.xlu0 %363 }
  0x98   :  { %v365_v59 = vrot.slane %v364_v57, 4 }
  0x9a   :  { %v366_v9 = vadd.f32 %v365_v59, %v364_v57 }
  0x9c   :  { %v367_v20 = vrot.slane %v366_v9, 2 }
  0x9e   :  { %v368_v21 = vadd.f32 %v367_v20, %v366_v9  ;;  %v154_v9 = vmul.f32 %v152_v61, %v1412_v1  ;;  %v296_v20 = vmul.f32 %v152_v61, %v1422_v5 }
  0x9f   :  { %v376_v26 = vpop.xlane.xlu0 %375 }
  0xa0   :  { %v377_v27 = vrot.slane %v376_v26, 4  ;;  %v369_v28 = vrot.slane %v368_v21, 1  ;;  %v160_v22 = vadd.f32 %v158_v13, %v154_v9  ;;  %v140_v9 = vstv %s1584_s9 }
  0xa2   :  { %v378_v30 = vadd.f32 %v377_v27, %v376_v26  ;;  %v370_v31 = vadd.f32 %v369_v28, %v368_v21  ;;  %v465_v36 = vpop.xlane.xlu1 %464  ;;  %v159_v21 = vadd.f32 %v157_v12, %v153_v63  ;;  %v164_v26 = vmul.f32 %v162_v14, %v1428_v7 }
  0xa3   :  { %v466_v37 = vrot.slane %v465_v36, 4  ;;  %v169_v27 = vmul.f32 %v168_v15, %v1432_v10  ;;  %v170_v28 = vmul.f32 %v168_v15, %v1434_v11  ;;  %v146_v12 = vstv %s1592_s11 }
  0xa4   :  { %v379_v32 = vrot.slane %v378_v30, 2  ;;  %1271 = vpush %v370_v31  ;;  %v165_v31 = vadd.f32 %v163_v25, %v159_v21  ;;  %v148_v25 = vmul.f32 %v146_v12, %v1434_v11 }
  0xa5   :  { %v467_v40 = vadd.f32 %v466_v37, %v465_v36  ;;  %v305_v37 = vmul.f32 %v168_v15, %v1450_v23 }
  0xa6   :  { %v380_v33 = vadd.f32 %v379_v32, %v378_v30  ;;  %v298_v30 = vmul.f32 %v156_v62, %v1439_v16  ;;  %v166_v32 = vadd.f32 %v164_v26, %v160_v22  ;;  %v147_v22 = vmul.f32 %v146_v12, %v1432_v10 }
  0xa7   :  { %v468_v43 = vrot.slane %v467_v40, 2 }
  0xa8   :  { %v381_v34 = vrot.slane %v380_v33, 1  ;;  %v300_v36 = vadd.f32 %v298_v30, %v296_v20 }
  0xa9   :  { %v469_v55 = vadd.f32 %v468_v43, %v467_v40  ;;  %v1610_v40 = vadd.f32 %v169_v27, %v165_v31  ;;  %v130_v43 = vstv %s1577_s7 }
  0xaa   :  { %v382_v35 = vadd.f32 %v381_v34, %v380_v33  ;;  %v477_v38 = vpop.xlane.xlu1 %476  ;;  %v301_v33 = vmul.f32 %v162_v14, %v1441_v17  ;;  %v302_v34 = vmul.f32 %v162_v14, %v1443_v18  ;;  %v132_v61 = vmul.f32 %v130_v43, %v1412_v1 }
  0xab   :  { %v478_v42 = vrot.slane %v477_v38, 4  ;;  %v470_v57 = vrot.slane %v469_v55, 1 }
  0xac   :  { %1273 = vpush %v382_v35  ;;  %v299_v35 = vadd.f32 %v297_v29, %v295_v19  ;;  %v142_v19 = vmul.f32 %v140_v9, %v1428_v7  ;;  %v282_v29 = vmul.f32 %v130_v43, %v1422_v5 }
  0xad   :  { %v479_v51 = vadd.f32 %v478_v42, %v477_v38  ;;  %v1581_v59 = vadd.f32 %v470_v57, %v469_v55  ;;  %v306_v38 = vmul.f32 %v168_v15, %v1452_v24  ;;  %v1612_v42 = vadd.f32 %v170_v28, %v166_v32 }
  0xae   :  { %v304_v55 = vadd.f32 %v302_v34, %v300_v36  ;;  %v131_v57 = vmul.f32 %v130_v43, %v1410_v0  ;;  %v141_v15 = vmul.f32 %v140_v9, %v1426_v6  ;;  %v281_v28 = vmul.f32 %v130_v43, %v1414_v2 }
  0xaf   :  { %v480_v52 = vrot.slane %v479_v51, 2 }
  0xb0   :  { %v1629_v14 = vadd.f32 %v306_v38, %v304_v55 }
  0xb1   :  { %v1575_v58 = vadd.f32 %v480_v52, %v479_v51  ;;  %v134_v51 = vstv %s1579_s8  ;;  %v303_v52 = vadd.f32 %v301_v33, %v299_v35 }
  0xb2   :  { %v135_v62 = vmul.f32 %v134_v51, %v1418_v3  ;;  %v136_v63 = vmul.f32 %v134_v51, %v1420_v4  ;;  %v753_v27 = vadd.f32 %v1629_v14, %v1612_v42  ;;  %v283_v33 = vmul.f32 %v134_v51, %v1430_v8 }
  0xb3   :  { %v482_v60 = vrot.slane %v1575_v58, 1  ;;  %v1627_v13 = vadd.f32 %v305_v37, %v303_v52  ;;  %v284_v52 = vmul.f32 %v134_v51, %v1439_v16 }
  0xb4   :  { %v137_v20 = vadd.f32 %v135_v62, %v131_v57  ;;  %v138_v21 = vadd.f32 %v136_v63, %v132_v61  ;;  %v759_v36 = vsel %vm359_vm0, %v753_v27, 0.0  ;;  %v285_v55 = vadd.f32 %v283_v33, %v281_v28 }
  0xb5   :  { %v752_v26 = vadd.f32 %v1627_v13, %v1610_v40  ;;  %v1650_v34 = vadd.f32 %v482_v60, %v1575_v58  ;;  %v287_v57 = vmul.f32 %v140_v9, %v1441_v17  ;;  %v288_v61 = vmul.f32 %v140_v9, %v1443_v18 }
  0xb6   :  { %v143_v31 = vadd.f32 %v141_v15, %v137_v20  ;;  %v144_v32 = vadd.f32 %v142_v19, %v138_v21  ;;  %v291_v58 = vmul.f32 %v146_v12, %v1450_v23  ;;  %v286_v60 = vadd.f32 %v284_v52, %v282_v29 }
  0xb7   :  { %v758_v35 = vsel %vm359_vm0, %v752_v26, 0.0  ;;  %v292_v62 = vmul.f32 %v146_v12, %v1452_v24  ;;  %v174_v63 = vstv %s1608_s15  ;;  %v178_v15 = vstv %s1616_s16 }
  0xb8   :  { %v760_v37 = vadd.f32 %v759_v36, %v758_v35  ;;  %v1654_v38 = vadd.f32 %v147_v22, %v143_v31  ;;  %v1656_v43 = vadd.f32 %v148_v25, %v144_v32  ;;  %v289_v19 = vadd.f32 %v287_v57, %v285_v55 }
  0xb9   :  { %v175_v20 = vmul.f32 %v174_v63, %v1410_v0  ;;  %v176_v51 = vmul.f32 %v174_v63, %v1412_v1  ;;  %v179_v21 = vmul.f32 %v178_v15, %v1418_v3  ;;  %v290_v22 = vadd.f32 %v288_v61, %v286_v60 }
  0xba   :  { %761 = vadd.xlane.f32.xlu2 %v760_v37  ;;  %v180_v25 = vmul.f32 %v178_v15, %v1420_v4  ;;  %v184_v26 = vstv %s1624_s18  ;;  %v190_v9 = vstv %s1633_s20  ;;  %v1671_v28 = vadd.f32 %v291_v58, %v289_v19 }
  0xbb   :  { %v181_v29 = vadd.f32 %v179_v21, %v175_v20  ;;  %v185_v12 = vmul.f32 %v184_v26, %v1426_v6  ;;  %v186_v31 = vmul.f32 %v184_v26, %v1428_v7  ;;  %v1677_v33 = vadd.f32 %v292_v62, %v290_v22 }
  0xbc   :  { %v182_v35 = vadd.f32 %v180_v25, %v176_v51  ;;  %v653_v36 = vadd.f32 %v1671_v28, %v1654_v38  ;;  %v191_v52 = vmul.f32 %v190_v9, %v1432_v10  ;;  %v192_v55 = vmul.f32 %v190_v9, %v1434_v11 }
  0xbd   :  { %v187_v37 = vadd.f32 %v185_v12, %v181_v29  ;;  %v654_v61 = vadd.f32 %v1677_v33, %v1656_v43  ;;  %v309_v60 = vmul.f32 %v174_v63, %v1414_v2  ;;  %v310_v20 = vmul.f32 %v174_v63, %v1422_v5 }
  0xbe   :  { %v188_v58 = vadd.f32 %v186_v31, %v182_v35  ;;  %v659_v19 = vsel %vm359_vm0, %v653_v36, 0.0  ;;  %v311_v51 = vmul.f32 %v178_v15, %v1430_v8  ;;  %v312_v29 = vmul.f32 %v178_v15, %v1439_v16 }
  0xbf   :  { %v1687_v62 = vadd.f32 %v191_v52, %v187_v37  ;;  %v660_v22 = vsel %vm359_vm0, %v654_v61, 0.0  ;;  %v316_v35 = vmul.f32 %v184_v26, %v1443_v18  ;;  %v319_v63 = vmul.f32 %v190_v9, %v1450_v23 }
  0xc0   :  { %v1694_v25 = vadd.f32 %v192_v55, %v188_v58  ;;  %v661_v12 = vadd.f32 %v660_v22, %v659_v19  ;;  %v313_v31 = vadd.f32 %v311_v51, %v309_v60  ;;  %v314_v37 = vadd.f32 %v312_v29, %v310_v20 }
  0xc1   :  { %v320_v52 = vmul.f32 %v190_v9, %v1452_v24  ;;  %v849_v55 = vmul.f32 %v1687_v62, %v1687_v62  ;;  %v651_v61 = vmul.f32 %v1654_v38, %v1654_v38  ;;  %v652_v9 = vmul.f32 %v1656_v43, %v1656_v43 }
  0xc2   :  { %662 = vadd.xlane.f32.xlu0 %v661_v12  ;;  %v850_v15 = vmul.f32 %v1694_v25, %v1694_v25  ;;  %v318_v58 = vadd.f32 %v316_v35, %v314_v37  ;;  %v655_v60 = vmul.f32 %v1671_v28, %v1671_v28  ;;  %v656_v20 = vmul.f32 %v1677_v33, %v1677_v33 }
  0xc3   :  { %v750_v51 = vmul.f32 %v1610_v40, %v1610_v40  ;;  %v755_v35 = vmul.f32 %v1629_v14, %v1629_v14 }
  0xc4   :  { %v1728_v29 = vadd.f32 %v320_v52, %v318_v58  ;;  %v657_v12 = vadd.f32 %v655_v60, %v651_v61 }
  0xc6   :  { %v671_v37 = vsel %vm359_vm0, %v657_v12, 0.0  ;;  %v228_v12 = vstv %s1709_s23 }
  0xd5   :  { %s1272_s6 = spop %1271 }
  0xd6   :  { %s1586_s10 = smul.f32 0.0015432099, %s1272_s6 }
  0xd8   :  { %s386_s12 = smul.f32 %s1586_s10, %s1586_s10 }
  0xdd   :  { %s1274_s13 = spop %1273 }
  0xde   :  { %s385_s14 = smul.f32 0.0015432099, %s1274_s13 }
  0xe0   :  { %s387_s17 = ssub.f32 %s385_s14, %s386_s12 }
  0xe2   :  { %s388_s0 = smax.f32 %s1385_s19, %s387_s17 }
  0xe3   :  { %s391_s21 = sadd.f32 1e-05, %s388_s0 }
  0xe5   :  { %v1643_v30 = vstv %s391_s21 }
  0xe6   :  { %1325 = vrsqrt.f32 %v1643_v30  ;;  %vm399_vm1 = vweird.f32 %v1643_v30 }
  0xec   :  { %v1326_v27 = vpop.eup %1325 }
  0xed   :  { %v394_v32 = vmul.f32 %v1326_v27, %v1643_v30  ;;  %vm400_vm2 = vweird.f32 %v1326_v27 }
  0xee   :  { %vm401_vm3 = vmor %vm399_vm1, %vm400_vm2 }
  0xef   :  { %v395_v57 = vmul.f32 %v1326_v27, %v394_v32  ;;  %v315_v32 = vmul.f32 %v184_v26, %v1441_v17 }
  0xf1   :  { %v396_v21 = vmul.f32 0.5, %v395_v57  ;;  %v317_v57 = vadd.f32 %v315_v32, %v313_v31  ;;  %v754_v31 = vmul.f32 %v1627_v13, %v1627_v13  ;;  %v658_v32 = vadd.f32 %v656_v20, %v652_v9 }
  0xf2   :  { %v222_v20 = vstv %s1701_s1 }
  0xf3   :  { %v397_v36 = vsub.f32 1.5, %v396_v21  ;;  %v1720_v19 = vadd.f32 %v319_v63, %v317_v57  ;;  %v751_v21 = vmul.f32 %v1612_v42, %v1612_v42  ;;  %v756_v63 = vadd.f32 %v754_v31, %v750_v51 }
  0xf4   :  { %v672_v61 = vsel %vm359_vm0, %v658_v32, 0.0  ;;  %v234_v31 = vstv %s1715_s24 }
  0xf5   :  { %v398_v26 = vmul.f32 %v1326_v27, %v397_v36  ;;  %v853_v30 = vmul.f32 %v1720_v19, %v1720_v19  ;;  %v218_v36 = vstv %s1691_s22  ;;  %v770_v60 = vsel %vm359_vm0, %v756_v63, 0.0  ;;  %s1386_s22 = smov 1  }
  0xf6   :  { %v219_v52 = vmul.f32 %v218_v36, %v1410_v0  ;;  %v220_v58 = vmul.f32 %v218_v36, %v1412_v1  ;;  %v235_v63 = vmul.f32 %v234_v31, %v1432_v10 }
  0xf7   :  { %v402_v22 = vsel %vm401_vm3, %v1326_v27, %v398_v26  ;;  %v854_v27 = vmul.f32 %v1728_v29, %v1728_v29  ;;  %v855_v57 = vadd.f32 %v853_v30, %v849_v55  ;;  %v757_v26 = vadd.f32 %v755_v35, %v751_v21 }
  0xf8   :  { %1275 = vpush %v402_v22  ;;  %v224_v55 = vmul.f32 %v222_v20, %v1420_v4 }
  0xf9   :  { %1277 = vpush %v1581_v59  ;;  %v856_v9 = vadd.f32 %v854_v27, %v850_v15  ;;  %v673_v59 = vadd.f32 %v672_v61, %v671_v37  ;;  %v869_v51 = vsel %vm359_vm0, %v855_v57, 0.0  ;;  %v771_v22 = vsel %vm359_vm0, %v757_v26, 0.0 }
  0xfa   :  { %1279 = vpush %v1650_v34  ;;  %v223_v34 = vmul.f32 %v222_v20, %v1418_v3  ;;  %v772_v15 = vadd.f32 %v771_v22, %v770_v60  ;;  %v226_v35 = vadd.f32 %v224_v55, %v220_v58  ;;  %v229_v27 = vmul.f32 %v228_v12, %v1426_v6 }
  0xfb   :  { %v870_v21 = vsel %vm359_vm0, %v856_v9, 0.0  ;;  %674 = vadd.xlane.f32.xlu1 %v673_v59  ;;  %v230_v37 = vmul.f32 %v228_v12, %v1428_v7  ;;  %v236_v57 = vmul.f32 %v234_v31, %v1434_v11  ;;  %v337_v61 = vmul.f32 %v218_v36, %v1414_v2 }
  0xfc   :  { %v871_v30 = vadd.f32 %v870_v21, %v869_v51  ;;  %v225_v32 = vadd.f32 %v223_v34, %v219_v52  ;;  %773 = vadd.xlane.f32.xlu0 %v772_v15  ;;  %v338_v9 = vmul.f32 %v218_v36, %v1422_v5  ;;  %v339_v52 = vmul.f32 %v222_v20, %v1430_v8 }
  0xfd   :  { %v340_v58 = vmul.f32 %v222_v20, %v1439_v16  ;;  %v232_v59 = vadd.f32 %v230_v37, %v226_v35  ;;  %v343_v60 = vmul.f32 %v228_v12, %v1441_v17  ;;  %v344_v51 = vmul.f32 %v228_v12, %v1443_v18 }
  0xfe   :  { %872 = vadd.xlane.f32.xlu2 %v871_v30  ;;  %v231_v26 = vadd.f32 %v229_v27, %v225_v32  ;;  %v347_v22 = vmul.f32 %v234_v31, %v1450_v23  ;;  %v341_v55 = vadd.f32 %v339_v52, %v337_v61  ;;  %v348_v15 = vmul.f32 %v234_v31, %v1452_v24 }
  0xff   :  { %v342_v21 = vadd.f32 %v340_v58, %v338_v9  ;;  %v1776_v36 = vadd.f32 %v236_v57, %v232_v59  ;;  %v851_v20 = vadd.f32 %v1720_v19, %v1687_v62  ;;  %v852_v30 = vadd.f32 %v1728_v29, %v1694_v25 }
 0x100   :  { %v1773_v34 = vadd.f32 %v235_v63, %v231_v26  ;;  %v196_v32 = vstv %s1747_s25  ;;  %v345_v12 = vadd.f32 %v343_v60, %v341_v55  ;;  %v200_v57 = vstv %s1753_s26 }
 0x101   :  { %v346_v35 = vadd.f32 %v344_v51, %v342_v21  ;;  %v197_v27 = vmul.f32 %v196_v32, %v1410_v0  ;;  %v198_v37 = vmul.f32 %v196_v32, %v1412_v1  ;;  %v857_v63 = vsel %vm359_vm0, %v851_v20, 0.0 }
 0x102   :  { %v858_v31 = vsel %vm359_vm0, %v852_v30, 0.0  ;;  %v206_v61 = vstv %s1758_s27  ;;  %v1789_v26 = vadd.f32 %v347_v22, %v345_v12  ;;  %v201_v58 = vmul.f32 %v200_v57, %v1418_v3 }
 0x103   :  { %v1791_v9 = vadd.f32 %v348_v15, %v346_v35  ;;  %v859_v52 = vadd.f32 %v858_v31, %v857_v63  ;;  %v202_v59 = vmul.f32 %v200_v57, %v1420_v4  ;;  %v207_v60 = vmul.f32 %v206_v61, %v1426_v6 }
 0x104   :  { %v208_v0 = vmul.f32 %v206_v61, %v1428_v7  ;;  %v212_v1 = vstv %s1765_s28  ;;  %v1049_v51 = vadd.f32 %v1789_v26, %v1773_v34  ;;  %v203_v22 = vadd.f32 %v201_v58, %v197_v27  ;;  %s1187_s28 = sld [smem:[#allocation5 + $0xa]] }
 0x105   :  { %v1050_v55 = vadd.f32 %v1791_v9, %v1776_v36  ;;  %860 = vadd.xlane.f32.xlu1 %v859_v52  ;;  %v213_v21 = vmul.f32 %v212_v1, %v1432_v10  ;;  %v204_v15 = vadd.f32 %v202_v59, %v198_v37  ;;  %v214_v3 = vmul.f32 %v212_v1, %v1434_v11 }
 0x106   :  { %v323_v4 = vmul.f32 %v196_v32, %v1414_v2  ;;  %v324_v6 = vmul.f32 %v196_v32, %v1422_v5  ;;  %v1055_v7 = vsel %vm359_vm0, %v1049_v51, 0.0  ;;  %v209_v30 = vadd.f32 %v207_v60, %v203_v22 }
 0x107   :  { %v1056_v20 = vsel %vm359_vm0, %v1050_v55, 0.0  ;;  %v325_v12 = vmul.f32 %v200_v57, %v1430_v8  ;;  %v210_v63 = vadd.f32 %v208_v0, %v204_v15  ;;  %v326_v27 = vmul.f32 %v200_v57, %v1439_v16 }
 0x108   :  { %v1057_v35 = vadd.f32 %v1056_v20, %v1055_v7  ;;  %v329_v10 = vmul.f32 %v206_v61, %v1441_v17  ;;  %v1811_v37 = vadd.f32 %v213_v21, %v209_v30  ;;  %v330_v2 = vmul.f32 %v206_v61, %v1443_v18 }
 0x109   :  { %v327_v11 = vadd.f32 %v325_v12, %v323_v4  ;;  %v333_v5 = vmul.f32 %v212_v1, %v1450_v23  ;;  %v1815_v32 = vadd.f32 %v214_v3, %v210_v63  ;;  %v328_v31 = vadd.f32 %v326_v27, %v324_v6  ;;  %v564_v27 = vpop.xlane.xlu2 %563 }
 0x10a   :  { %1058 = vadd.xlane.f32.xlu2 %v1057_v35  ;;  %v334_v52 = vmul.f32 %v212_v1, %v1452_v24  ;;  %v948_v16 = vmul.f32 %v1811_v37, %v1811_v37  ;;  %v1047_v17 = vmul.f32 %v1773_v34, %v1773_v34  ;;  %v1048_v18 = vmul.f32 %v1776_v36, %v1776_v36 }
 0x10b   :  { %v331_v8 = vadd.f32 %v329_v10, %v327_v11  ;;  %v332_v58 = vadd.f32 %v330_v2, %v328_v31  ;;  %v949_v57 = vmul.f32 %v1815_v32, %v1815_v32  ;;  %v1051_v24 = vmul.f32 %v1789_v26, %v1789_v26 }
 0x10c   :  { %v1052_v61 = vmul.f32 %v1791_v9, %v1791_v9 }
 0x10d   :  { %v1818_v59 = vadd.f32 %v333_v5, %v331_v8  ;;  %v1826_v23 = vadd.f32 %v334_v52, %v332_v58  ;;  %v1053_v3 = vadd.f32 %v1051_v24, %v1047_v17 }
 0x10e   :  { %v1054_v4 = vadd.f32 %v1052_v61, %v1048_v18  ;;  %v565_v18 = vrot.slane %v564_v27, 4 }
 0x10f   :  { %v950_v60 = vadd.f32 %v1818_v59, %v1811_v37  ;;  %v952_v0 = vmul.f32 %v1818_v59, %v1818_v59  ;;  %v951_v1 = vadd.f32 %v1826_v23, %v1815_v32  ;;  %v953_v51 = vmul.f32 %v1826_v23, %v1826_v23 }
 0x110   :  { %v1067_v12 = vsel %vm359_vm0, %v1053_v3, 0.0  ;;  %v1068_v35 = vsel %vm359_vm0, %v1054_v4, 0.0 }
 0x111   :  { %v956_v55 = vsel %vm359_vm0, %v950_v60, 0.0  ;;  %v954_v22 = vadd.f32 %v952_v0, %v948_v16  ;;  %v957_v21 = vsel %vm359_vm0, %v951_v1, 0.0  ;;  %v955_v15 = vadd.f32 %v953_v51, %v949_v57  ;;  %v576_v8 = vpop.xlane.xlu2 %575 }
 0x112   :  { %v958_v6 = vadd.f32 %v957_v21, %v956_v55  ;;  %v1069_v63 = vadd.f32 %v1068_v35, %v1067_v12  ;;  %v577_v57 = vrot.slane %v576_v8, 4  ;;  %v566_v60 = vadd.f32 %v565_v18, %v564_v27 }
 0x113   :  { %v968_v7 = vsel %vm359_vm0, %v954_v22, 0.0  ;;  %v969_v20 = vsel %vm359_vm0, %v955_v15, 0.0 }
 0x114   :  { %959 = vadd.xlane.f32.xlu0 %v958_v6  ;;  %v970_v30 = vadd.f32 %v969_v20, %v968_v7  ;;  %v567_v1 = vrot.slane %v566_v60, 2 }
 0x116   :  { %971 = vadd.xlane.f32.xlu1 %v970_v30  ;;  %v568_v3 = vadd.f32 %v567_v1, %v566_v60 }
 0x118   :  { %v569_v20 = vrot.slane %v568_v3, 1 }
 0x11c   :  { %1070 = vadd.xlane.f32.xlu0 %v1069_v63  ;;  %v570_v63 = vadd.f32 %v569_v20, %v568_v3 }
 0x129   :  { %s1276_s3 = spop %1275 }
 0x12a   :  { %s404_s4 = smul.f32 %s1276_s3, %s1183_s29  ;;  %s1278_s5 = spop %1277 }
 0x12b   :  { %s1848_s6 = smul.f32 0.0015432099, %s1278_s5  ;;  %s1280_s7 = spop %1279 }
 0x12c   :  { %s405_s8 = smul.f32 %s404_s4, %s1586_s10  ;;  %v417_v10 = vstv %s404_s4  ;;  %s1188_s29 = sld [smem:[#allocation5 + $0xb]] }
 0x12d   :  { %s487_s9 = smul.f32 %s1848_s6, %s1848_s6  ;;  %v436_v11 = vmul.f32 %v417_v10, %v1475_v50  ;;  %v419_v2 = vmul.f32 %v417_v10, %v1471_v46  ;;  %v418_v5 = vmul.f32 %v417_v10, %v1469_v45  ;;  %v437_v61 = vmul.f32 %v417_v10, %v1484_v56  ;;  %v1887_v10 = vpop.xlane.xlu2 %761 }
 0x12e   :  { %s406_s11 = ssub.f32 %s1184_s30, %s405_s8  ;;  %s486_s12 = smul.f32 0.0015432099, %s1280_s7  ;;  %v578_v56 = vadd.f32 %v577_v57, %v576_v8 }
 0x130   :  { %s407_s13 = smax.f32 %s1385_s19, %s406_s11  ;;  %v420_v31 = vstv %s406_s11  ;;  %s488_s14 = ssub.f32 %s486_s12, %s487_s9  ;;  %v579_v22 = vrot.slane %v578_v56, 2 }
 0x131   :  { %v408_v52 = vstv %s407_s13  ;;  %v438_v58 = vadd.f32 %v436_v11, %v420_v31  ;;  %v422_v16 = vadd.f32 %v420_v31, %v419_v2  ;;  %v421_v17 = vadd.f32 %v420_v31, %v418_v5 }
 0x132   :  { %s489_s10 = smax.f32 %s1385_s19, %s488_s14  ;;  %411 = vst.msk [vmem:[%s2317_s2 + $0x8] sm:$0xff] %vm409_vm4, %v408_v52  ;;  %v439_v0 = vadd.f32 %v437_v61, %v420_v31  ;;  %v580_v4 = vadd.f32 %v579_v22, %v578_v56 }
 0x133   :  { %s492_s17 = sadd.f32 1e-05, %s489_s10  ;;  %v440_v45 = vmax.f32 %v438_v58, 0.0  ;;  %v424_v46 = vmax.f32 %v422_v16, 0.0  ;;  %v423_v50 = vmax.f32 %v421_v17, 0.0  ;;  %410 = vst.msk [vmem:[%s2317_s2] sm:$0xff] %vm409_vm4, %v408_v52 }
 0x134   :  { %413 = vst.msk [vmem:[%s2317_s2 + $0x10] sm:$0x3] %vm412_vm5, %v408_v52  ;;  %v441_v51 = vmax.f32 %v439_v0, 0.0  ;;  %v581_v30 = vrot.slane %v580_v4, 1 }
 0x135   :  { %v493_v24 = vstv %s492_s17  ;;  %444 = vrot.lane.b32.xlu0 %v440_v45, %s1386_s22  ;;  %429 = vrot.lane.b32.xlu2 %v424_v46, %s1386_s22  ;;  %414 = vst.msk [vmem:[%s2317_s2 + $0xc0] sm:$0xff] %vm409_vm4, %v408_v52  ;;  %v663_v5 = vpop.xlane.xlu0 %662 }
 0x136   :  { %1327 = vrsqrt.f32 %v493_v24  ;;  %427 = vrot.lane.b32.xlu1 %v423_v50, %s1386_s22  ;;  %415 = vst.msk [vmem:[%s2317_s2 + $0xc8] sm:$0xff] %vm409_vm4, %v408_v52  ;;  %vm500_vm7 = vweird.f32 %v493_v24  ;;  %v582_v27 = vadd.f32 %v581_v30, %v580_v4  ;;  %v664_v50 = vrot.slane %v663_v5, 4 }
 0x137   :  { %416 = vst.msk [vmem:[%s2317_s2 + $0xd0] sm:$0x3] %vm412_vm5, %v408_v52 }
 0x138   :  { %v665_v0 = vadd.f32 %v664_v50, %v663_v5 }
 0x13c   :  { %v1328_v55 = vpop.eup %1327 }
 0x13d   :  { %v495_v21 = vmul.f32 %v1328_v55, %v493_v24  ;;  %446 = vrot.lane.b32.xlu2 %v441_v51, %s1386_s22  ;;  %vm501_vm6 = vweird.f32 %v1328_v55 }
 0x13e   :  { %vm502_vm8 = vmor %vm500_vm7, %vm501_vm6 }
 0x13f   :  { %v496_v15 = vmul.f32 %v1328_v55, %v495_v21 }
 0x141   :  { %v497_v6 = vmul.f32 0.5, %v496_v15 }
 0x143   :  { %v498_v7 = vsub.f32 1.5, %v497_v6 }
 0x145   :  { %v499_v12 = vmul.f32 %v1328_v55, %v498_v7 }
 0x147   :  { %v503_v35 = vsel %vm502_vm8, %v1328_v55, %v499_v12  ;;  %v666_v55 = vrot.slane %v665_v0, 2 }
 0x148   :  { %1281 = vpush %v503_v35 }
 0x149   :  { %1283 = vpush %v570_v63  ;;  %v667_v6 = vadd.f32 %v666_v55, %v665_v0  ;;  %v763_v0 = vrot.slane %v1887_v10, 4 }
 0x14a   :  { %1285 = vpush %v582_v27 }
 0x14b   :  { %v668_v12 = vrot.slane %v667_v6, 1 }
 0x16e   :  { %v675_v17 = vpop.xlane.xlu1 %674 }
 0x16f   :  { %v676_v57 = vrot.slane %v675_v17, 4  ;;  %v1931_v51 = vpop.xlane.xlu0 %773 }
 0x171   :  { %v1891_v11 = vpop.xlane.xlu2 %872  ;;  %v677_v56 = vadd.f32 %v676_v57, %v675_v17 }
 0x173   :  { %v678_v21 = vrot.slane %v677_v56, 2 }
 0x175   :  { %v679_v7 = vadd.f32 %v678_v21, %v677_v56  ;;  %v775_v56 = vrot.slane %v1931_v51, 4 }
 0x177   :  { %v680_v63 = vrot.slane %v679_v7, 1 }
 0x178   :  { %v1940_v27 = vpop.xlane.xlu1 %860 }
 0x179   :  { %s1282_s30 = spop %1281 }
 0x17a   :  { %s505_s3 = smul.f32 %s1282_s30, %s1187_s28  ;;  %s1284_s4 = spop %1283 }
 0x17b   :  { %s1889_s5 = smul.f32 0.0015432099, %s1284_s4  ;;  %s1286_s7 = spop %1285 }
 0x17c   :  { %s506_s8 = smul.f32 %s505_s3, %s1848_s6  ;;  %v517_v2 = vstv %s505_s3 }
 0x17d   :  { %s586_s9 = smul.f32 %s1889_s5, %s1889_s5  ;;  %v519_v31 = vmul.f32 %v517_v2, %v1513_v41  ;;  %v535_v52 = vmul.f32 %v517_v2, %v1515_v44  ;;  %v518_v8 = vmul.f32 %v517_v2, %v1511_v39  ;;  %v1915_v61 = vpop.xlane.xlu2 %1058  ;;  %v536_v60 = vmul.f32 %v517_v2, %v1517_v47 }
 0x17e   :  { %s507_s11 = ssub.f32 %s1188_s29, %s506_s8  ;;  %s585_s12 = smul.f32 0.0015432099, %s1286_s7 }
 0x180   :  { %s508_s13 = smax.f32 %s1385_s19, %s507_s11  ;;  %v520_v58 = vstv %s507_s11  ;;  %s587_s14 = ssub.f32 %s585_s12, %s586_s9 }
 0x181   :  { %v509_v16 = vstv %s508_s13  ;;  %v522_v18 = vadd.f32 %v520_v58, %v519_v31  ;;  %v537_v45 = vadd.f32 %v535_v52, %v520_v58  ;;  %v521_v46 = vadd.f32 %v520_v58, %v518_v8  ;;  %s1199_s9 = sld [smem:[#allocation5 + $0x10]] }
 0x182   :  { %s588_s6 = smax.f32 %s1385_s19, %s587_s14  ;;  %1189 = vst.msk [vmem:[%s2317_s2 + $0x18] sm:$0xff] %vm409_vm4, %v509_v16  ;;  %v538_v1 = vadd.f32 %v536_v60, %v520_v58  ;;  %v669_v31 = vadd.f32 %v668_v12, %v667_v6  ;;  %v681_v52 = vadd.f32 %v680_v63, %v679_v7  ;;  %s1200_s11 = sld [smem:[#allocation5 + $0x11]] }
 0x183   :  { %s591_s16 = sadd.f32 1e-05, %s588_s6  ;;  %v524_v41 = vmax.f32 %v522_v18, 0.0  ;;  %v539_v39 = vmax.f32 %v537_v45, 0.0  ;;  %v523_v44 = vmax.f32 %v521_v46, 0.0  ;;  %1190 = vst.msk [vmem:[%s2317_s2 + $0x20] sm:$0xff] %vm409_vm4, %v509_v16 }
 0x184   :  { %1191 = vst.msk [vmem:[%s2317_s2 + $0x28] sm:$0x3] %vm412_vm5, %v509_v16  ;;  %v540_v15 = vmax.f32 %v538_v1, 0.0 }
 0x185   :  { %v592_v24 = vstv %s591_s16  ;;  %529 = vrot.lane.b32.xlu0 %v524_v41, %s1386_s22  ;;  %543 = vrot.lane.b32.xlu2 %v539_v39, %s1386_s22  ;;  %1192 = vst.msk [vmem:[%s2317_s2 + $0xd8] sm:$0xff] %vm409_vm4, %v509_v16 }
 0x186   :  { %1329 = vrsqrt.f32 %v592_v24  ;;  %527 = vrot.lane.b32.xlu1 %v523_v44, %s1386_s22  ;;  %1193 = vst.msk [vmem:[%s2317_s2 + $0xe0] sm:$0xff] %vm409_vm4, %v509_v16  ;;  %vm599_vm11 = vweird.f32 %v592_v24 }
 0x187   :  { %1194 = vst.msk [vmem:[%s2317_s2 + $0xe8] sm:$0x3] %vm412_vm5, %v509_v16  ;;  %v1938_v35 = vpop.xlane.xlu0 %959 }
 0x189   :  { %v1948_v16 = vpop.xlane.xlu1 %971 }
 0x18c   :  { %v1330_v22 = vpop.eup %1329 }
 0x18d   :  { %v594_v47 = vmul.f32 %v1330_v22, %v592_v24  ;;  %vm600_vm10 = vweird.f32 %v1330_v22 }
 0x18e   :  { %545 = vrot.lane.b32.xlu1 %v540_v15, %s1386_s22  ;;  %vm601_vm12 = vmor %vm599_vm11, %vm600_vm10  ;;  %v776_v15 = vadd.f32 %v775_v56, %v1931_v51 }
 0x18f   :  { %v430_v3 = vpop.permute.xlu2 %429  ;;  %v595_v4 = vmul.f32 %v1330_v22, %v594_v47  ;;  %v1946_v58 = vpop.xlane.xlu0 %1070 }
 0x190   :  { %435 = vst.msk [vmem:[%s2317_s2 + $0x9] sm:$0xff] %vm433_vm9, %v430_v3 }
 0x191   :  { %v596_v20 = vmul.f32 0.5, %v595_v4  ;;  %v777_v4 = vrot.slane %v776_v15, 2 }
 0x193   :  { %v597_v30 = vsub.f32 1.5, %v596_v20 }
 0x195   :  { %v598_v2 = vmul.f32 %v1330_v22, %v597_v30 }
 0x197   :  { %v602_v5 = vsel %vm601_vm12, %v1330_v22, %v598_v2  ;;  %v447_v8 = vpop.permute.xlu2 %446  ;;  %v764_v22 = vadd.f32 %v763_v0, %v1887_v10  ;;  %v778_v10 = vadd.f32 %v777_v4, %v776_v15 }
 0x198   :  { %1287 = vpush %v602_v5 }
 0x199   :  { %1289 = vpush %v669_v31  ;;  %v765_v47 = vrot.slane %v764_v22, 2  ;;  %v779_v2 = vrot.slane %v778_v10, 1 }
 0x19a   :  { %1291 = vpush %v681_v52 }
 0x19b   :  { %1186 = vst.msk [vmem:[%s2317_s2 + $0xc9] sm:$0xff] %vm433_vm9, %v447_v8  ;;  %v766_v30 = vadd.f32 %v765_v47, %v764_v22  ;;  %v780_v8 = vadd.f32 %v779_v2, %v778_v10 }
 0x19d   :  { %v767_v51 = vrot.slane %v766_v30, 1 }
 0x19f   :  { %v768_v52 = vadd.f32 %v767_v51, %v766_v30 }
 0x1a7   :  { %v445_v17 = vpop.permute.xlu0 %444 }
 0x1a8   :  { %v428_v18 = vpop.permute.xlu1 %427  ;;  %1185 = vst.msk [vmem:[%s2317_s2 + $0xc1] sm:$0xff] %vm433_vm9, %v445_v17 }
 0x1a9   :  { %434 = vst.msk [vmem:[%s2317_s2 + $0x1] sm:$0xff] %vm433_vm9, %v428_v18 }
 0x1c9   :  { %s1288_s12 = spop %1287 }
 0x1ca   :  { %s604_s13 = smul.f32 %s1288_s12, %s1199_s9  ;;  %s1290_s14 = spop %1289 }
 0x1cb   :  { %s1958_s6 = smul.f32 0.0015432099, %s1290_s14  ;;  %s1292_s10 = spop %1291 }
 0x1cc   :  { %s605_s15 = smul.f32 %s604_s13, %s1889_s5  ;;  %v616_v45 = vstv %s604_s13 }
 0x1cd   :  { %s685_s16 = smul.f32 %s1958_s6, %s1958_s6  ;;  %v617_v46 = vmul.f32 %v616_v45, %v1551_v48  ;;  %v618_v50 = vmul.f32 %v616_v45, %v1553_v49  ;;  %v634_v41 = vmul.f32 %v616_v45, %v1555_v53  ;;  %v635_v55 = vmul.f32 %v616_v45, %v1557_v54 }
 0x1ce   :  { %s606_s17 = ssub.f32 %s1200_s11, %s605_s15  ;;  %s684_s18 = smul.f32 0.0015432099, %s1292_s10 }
 0x1d0   :  { %s607_s0 = smax.f32 %s1385_s19, %s606_s17  ;;  %v619_v39 = vstv %s606_s17  ;;  %s686_s20 = ssub.f32 %s684_s18, %s685_s16 }
 0x1d1   :  { %v608_v44 = vstv %s607_s0  ;;  %v620_v57 = vadd.f32 %v619_v39, %v617_v46  ;;  %v621_v24 = vadd.f32 %v619_v39, %v618_v50  ;;  %v636_v60 = vadd.f32 %v634_v41, %v619_v39  ;;  %s1211_s16 = sld [smem:[#allocation5 + $0x16]] }
 0x1d2   :  { %1201 = vst.msk [vmem:[%s2317_s2 + $0x30] sm:$0xff] %vm409_vm4, %v608_v44  ;;  %s687_s1 = smax.f32 %s1385_s19, %s686_s20  ;;  %v637_v21 = vadd.f32 %v635_v55, %v619_v39  ;;  %s1212_s17 = sld [smem:[#allocation5 + $0x17]] }
 0x1d3   :  { %1202 = vst.msk [vmem:[%s2317_s2 + $0x38] sm:$0xff] %vm409_vm4, %v608_v44  ;;  %s690_s25 = sadd.f32 1e-05, %s687_s1  ;;  %v622_v48 = vmax.f32 %v620_v57, 0.0  ;;  %v623_v49 = vmax.f32 %v621_v24, 0.0  ;;  %v638_v53 = vmax.f32 %v636_v60, 0.0 }
 0x1d4   :  { %1203 = vst.msk [vmem:[%s2317_s2 + $0x40] sm:$0x3] %vm412_vm5, %v608_v44  ;;  %v639_v54 = vmax.f32 %v637_v21, 0.0 }
 0x1d5   :  { %1204 = vst.msk [vmem:[%s2317_s2 + $0xf0] sm:$0xff] %vm409_vm4, %v608_v44  ;;  %v691_v1 = vstv %s690_s25  ;;  %626 = vrot.lane.b32.xlu0 %v622_v48, %s1386_s22  ;;  %628 = vrot.lane.b32.xlu2 %v623_v49, %s1386_s22  ;;  %v862_v48 = vrot.slane %v1940_v27, 4  ;;  %v874_v49 = vrot.slane %v1891_v11, 4 }
 0x1d6   :  { %1205 = vst.msk [vmem:[%s2317_s2 + $0xf8] sm:$0xff] %vm409_vm4, %v608_v44  ;;  %1331 = vrsqrt.f32 %v691_v1  ;;  %642 = vrot.lane.b32.xlu1 %v638_v53, %s1386_s22  ;;  %vm698_vm14 = vweird.f32 %v691_v1 }
 0x1d7   :  { %1206 = vst.msk [vmem:[%s2317_s2 + $0x100] sm:$0x3] %vm412_vm5, %v608_v44  ;;  %v875_v55 = vadd.f32 %v874_v49, %v1891_v11 }
 0x1d9   :  { %v876_v47 = vrot.slane %v875_v55, 2 }
 0x1dc   :  { %v1332_v3 = vpop.eup %1331 }
 0x1dd   :  { %v693_v6 = vmul.f32 %v1332_v3, %v691_v1  ;;  %644 = vrot.lane.b32.xlu0 %v639_v54, %s1386_s22  ;;  %vm699_vm13 = vweird.f32 %v1332_v3  ;;  %v863_v1 = vadd.f32 %v862_v48, %v1940_v27  ;;  %v877_v27 = vadd.f32 %v876_v47, %v875_v55 }
 0x1de   :  { %vm700_vm15 = vmor %vm698_vm14, %vm699_vm13 }
 0x1df   :  { %v544_v7 = vpop.permute.xlu2 %543  ;;  %v694_v20 = vmul.f32 %v1332_v3, %v693_v6  ;;  %v864_v21 = vrot.slane %v863_v1, 2  ;;  %v878_v30 = vrot.slane %v877_v27, 1 }
 0x1e0   :  { %1197 = vst.msk [vmem:[%s2317_s2 + $0xd9] sm:$0xff] %vm433_vm9, %v544_v7 }
 0x1e1   :  { %v695_v12 = vmul.f32 0.5, %v694_v20  ;;  %v879_v51 = vadd.f32 %v878_v30, %v877_v27 }
 0x1e3   :  { %v696_v63 = vsub.f32 1.5, %v695_v12 }
 0x1e5   :  { %v697_v5 = vmul.f32 %v1332_v3, %v696_v63 }
 0x1e7   :  { %v701_v31 = vsel %vm700_vm15, %v1332_v3, %v697_v5 }
 0x1e8   :  { %1293 = vpush %v701_v31 }
 0x1e9   :  { %1295 = vpush %v768_v52 }
 0x1ea   :  { %1297 = vpush %v780_v8 }
 0x1f7   :  { %v530_v17 = vpop.permute.xlu0 %529 }
 0x1f8   :  { %v528_v18 = vpop.permute.xlu1 %527  ;;  %1196 = vst.msk [vmem:[%s2317_s2 + $0x21] sm:$0xff] %vm433_vm9, %v530_v17 }
 0x1f9   :  { %1195 = vst.msk [vmem:[%s2317_s2 + $0x19] sm:$0xff] %vm433_vm9, %v528_v18 }
 0x200   :  { %v546_v45 = vpop.permute.xlu1 %545 }
 0x201   :  { %1198 = vst.msk [vmem:[%s2317_s2 + $0xe1] sm:$0xff] %vm433_vm9, %v546_v45 }
 0x219   :  { %s1294_s18 = spop %1293 }
 0x21a   :  { %s703_s0 = smul.f32 %s1294_s18, %s1211_s16  ;;  %s1296_s20 = spop %1295 }
 0x21b   :  { %s2017_s5 = smul.f32 0.0015432099, %s1296_s20  ;;  %s1298_s21 = spop %1297 }
 0x21c   :  { %s704_s1 = smul.f32 %s703_s0, %s1958_s6  ;;  %v715_v46 = vstv %s703_s0 }
 0x21d   :  { %s784_s23 = smul.f32 %s2017_s5, %s2017_s5  ;;  %v733_v50 = vmul.f32 %v715_v46, %v1671_v28  ;;  %v717_v41 = vmul.f32 %v715_v46, %v1656_v43  ;;  %v716_v39 = vmul.f32 %v715_v46, %v1654_v38  ;;  %v734_v56 = vmul.f32 %v715_v46, %v1677_v33 }
 0x21e   :  { %s705_s24 = ssub.f32 %s1212_s17, %s704_s1  ;;  %s783_s25 = smul.f32 0.0015432099, %s1298_s21  ;;  %v865_v33 = vadd.f32 %v864_v21, %v863_v1 }
 0x220   :  { %s706_s26 = smax.f32 %s1385_s19, %s705_s24  ;;  %v718_v44 = vstv %s705_s24  ;;  %s785_s27 = ssub.f32 %s783_s25, %s784_s23  ;;  %v866_v11 = vrot.slane %v865_v33, 1 }
 0x221   :  { %v707_v57 = vstv %s706_s26  ;;  %v735_v24 = vadd.f32 %v733_v50, %v718_v44  ;;  %v720_v60 = vadd.f32 %v718_v44, %v717_v41  ;;  %v719_v0 = vadd.f32 %v718_v44, %v716_v39  ;;  %s1223_s23 = sld [smem:[#allocation5 + $0x1c]] }
 0x222   :  { %1213 = vst.msk [vmem:[%s2317_s2 + $0x48] sm:$0xff] %vm409_vm4, %v707_v57  ;;  %s786_s29 = smax.f32 %s1385_s19, %s785_s27  ;;  %v736_v22 = vadd.f32 %v734_v56, %v718_v44  ;;  %v867_v63 = vadd.f32 %v866_v11, %v865_v33  ;;  %s1224_s24 = sld [smem:[#allocation5 + $0x1d]]  ;;  %v961_v44 = vrot.slane %v1938_v35, 4 }
 0x223   :  { %1214 = vst.msk [vmem:[%s2317_s2 + $0x50] sm:$0xff] %vm409_vm4, %v707_v57  ;;  %s789_s4 = sadd.f32 1e-05, %s786_s29  ;;  %v737_v38 = vmax.f32 %v735_v24, 0.0  ;;  %v722_v43 = vmax.f32 %v720_v60, 0.0  ;;  %v721_v28 = vmax.f32 %v719_v0, 0.0 }
 0x224   :  { %1215 = vst.msk [vmem:[%s2317_s2 + $0x58] sm:$0x3] %vm412_vm5, %v707_v57  ;;  %v738_v54 = vmax.f32 %v736_v22, 0.0  ;;  %v962_v0 = vadd.f32 %v961_v44, %v1938_v35 }
 0x225   :  { %1216 = vst.msk [vmem:[%s2317_s2 + $0x108] sm:$0xff] %vm409_vm4, %v707_v57  ;;  %v790_v53 = vstv %s789_s4  ;;  %741 = vrot.lane.b32.xlu0 %v737_v38, %s1386_s22  ;;  %727 = vrot.lane.b32.xlu1 %v722_v43, %s1386_s22 }
 0x226   :  { %1217 = vst.msk [vmem:[%s2317_s2 + $0x110] sm:$0xff] %vm409_vm4, %v707_v57  ;;  %1333 = vrsqrt.f32 %v790_v53  ;;  %725 = vrot.lane.b32.xlu2 %v721_v28, %s1386_s22  ;;  %vm797_vm1 = vweird.f32 %v790_v53  ;;  %v963_v43 = vrot.slane %v962_v0, 2 }
 0x227   :  { %1218 = vst.msk [vmem:[%s2317_s2 + $0x118] sm:$0x3] %vm412_vm5, %v707_v57  ;;  %v973_v57 = vrot.slane %v1948_v16, 4 }
 0x228   :  { %v964_v55 = vadd.f32 %v963_v43, %v962_v0 }
 0x229   :  { %v974_v48 = vadd.f32 %v973_v57, %v1948_v16 }
 0x22a   :  { %v965_v16 = vrot.slane %v964_v55, 1 }
 0x22b   :  { %v975_v49 = vrot.slane %v974_v48, 2 }
 0x22c   :  { %v1334_v15 = vpop.eup %1333 }
 0x22d   :  { %v792_v3 = vmul.f32 %v1334_v15, %v790_v53  ;;  %vm798_vm0 = vweird.f32 %v1334_v15  ;;  %v976_v22 = vadd.f32 %v975_v49, %v974_v48 }
 0x22e   :  { %743 = vrot.lane.b32.xlu2 %v738_v54, %s1386_s22  ;;  %vm799_vm2 = vmor %vm797_vm1, %vm798_vm0 }
 0x22f   :  { %v629_v4 = vpop.permute.xlu2 %628  ;;  %v793_v6 = vmul.f32 %v1334_v15, %v792_v3  ;;  %v966_v3 = vadd.f32 %v965_v16, %v964_v55 }
 0x230   :  { %1208 = vst.msk [vmem:[%s2317_s2 + $0x39] sm:$0xff] %vm433_vm9, %v629_v4 }
 0x231   :  { %v794_v7 = vmul.f32 0.5, %v793_v6 }
 0x233   :  { %v795_v20 = vsub.f32 1.5, %v794_v7 }
 0x235   :  { %v796_v10 = vmul.f32 %v1334_v15, %v795_v20 }
 0x237   :  { %v800_v12 = vsel %vm799_vm2, %v1334_v15, %v796_v10  ;;  %v977_v15 = vrot.slane %v976_v22, 1 }
 0x238   :  { %1299 = vpush %v800_v12 }
 0x239   :  { %1301 = vpush %v867_v63  ;;  %v978_v4 = vadd.f32 %v977_v15, %v976_v22 }
 0x23a   :  { %1303 = vpush %v879_v51 }
 0x247   :  { %v627_v2 = vpop.permute.xlu0 %626 }
 0x248   :  { %v643_v5 = vpop.permute.xlu1 %642  ;;  %1207 = vst.msk [vmem:[%s2317_s2 + $0x31] sm:$0xff] %vm433_vm9, %v627_v2 }
 0x249   :  { %1209 = vst.msk [vmem:[%s2317_s2 + $0xf1] sm:$0xff] %vm433_vm9, %v643_v5  ;;  %v1060_v5 = vrot.slane %v1915_v61, 4 }
 0x24f   :  { %v645_v31 = vpop.permute.xlu0 %644 }
 0x250   :  { %1210 = vst.msk [vmem:[%s2317_s2 + $0xf9] sm:$0xff] %vm433_vm9, %v645_v31  ;;  %v1072_v31 = vrot.slane %v1946_v58, 4 }
 0x269   :  { %s1300_s25 = spop %1299 }
 0x26a   :  { %s802_s26 = smul.f32 %s1300_s25, %s1223_s23  ;;  %s1302_s27 = spop %1301 }
 0x26b   :  { %s2076_s6 = smul.f32 0.0015432099, %s1302_s27  ;;  %s1304_s28 = spop %1303 }
 0x26c   :  { %s803_s29 = smul.f32 %s802_s26, %s2017_s5  ;;  %v814_v52 = vstv %s802_s26 }
 0x26d   :  { %s883_s30 = smul.f32 %s2076_s6, %s2076_s6  ;;  %v832_v8 = vmul.f32 %v814_v52, %v1627_v13  ;;  %v816_v17 = vmul.f32 %v814_v52, %v1612_v42  ;;  %v815_v18 = vmul.f32 %v814_v52, %v1610_v40  ;;  %v833_v60 = vmul.f32 %v814_v52, %v1629_v14 }
 0x26e   :  { %s804_s3 = ssub.f32 %s1224_s24, %s803_s29  ;;  %s882_s4 = smul.f32 0.0015432099, %s1304_s28 }
 0x270   :  { %s805_s7 = smax.f32 %s1385_s19, %s804_s3  ;;  %v817_v45 = vstv %s804_s3  ;;  %s884_s8 = ssub.f32 %s882_s4, %s883_s30 }
 0x271   :  { %v806_v46 = vstv %s805_s7  ;;  %v834_v50 = vadd.f32 %v832_v8, %v817_v45  ;;  %v819_v41 = vadd.f32 %v817_v45, %v816_v17  ;;  %v818_v39 = vadd.f32 %v817_v45, %v815_v18  ;;  %s1235_s30 = sld [smem:[#allocation5 + $0x22]] }
 0x272   :  { %1225 = vst.msk [vmem:[%s2317_s2 + $0x60] sm:$0xff] %vm409_vm4, %v806_v46  ;;  %s885_s11 = smax.f32 %s1385_s19, %s884_s8  ;;  %v835_v38 = vadd.f32 %v833_v60, %v817_v45  ;;  %s1236_s3 = sld [smem:[#allocation5 + $0x23]]  ;;  %v1061_v17 = vadd.f32 %v1060_v5, %v1915_v61  ;;  %v1073_v45 = vadd.f32 %v1072_v31, %v1946_v58 }
 0x273   :  { %1226 = vst.msk [vmem:[%s2317_s2 + $0x68] sm:$0xff] %vm409_vm4, %v806_v46  ;;  %s888_s14 = sadd.f32 1e-05, %s885_s11  ;;  %v836_v40 = vmax.f32 %v834_v50, 0.0  ;;  %v821_v42 = vmax.f32 %v819_v41, 0.0  ;;  %v820_v13 = vmax.f32 %v818_v39, 0.0 }
 0x274   :  { %1227 = vst.msk [vmem:[%s2317_s2 + $0x70] sm:$0x3] %vm412_vm5, %v806_v46  ;;  %v837_v53 = vmax.f32 %v835_v38, 0.0  ;;  %v1074_v41 = vrot.slane %v1073_v45, 2 }
 0x275   :  { %1228 = vst.msk [vmem:[%s2317_s2 + $0x120] sm:$0xff] %vm409_vm4, %v806_v46  ;;  %v889_v24 = vstv %s888_s14  ;;  %840 = vrot.lane.b32.xlu2 %v836_v40, %s1386_s22  ;;  %826 = vrot.lane.b32.xlu0 %v821_v42, %s1386_s22 }
 0x276   :  { %1229 = vst.msk [vmem:[%s2317_s2 + $0x128] sm:$0xff] %vm409_vm4, %v806_v46  ;;  %1335 = vrsqrt.f32 %v889_v24  ;;  %824 = vrot.lane.b32.xlu1 %v820_v13, %s1386_s22  ;;  %vm896_vm6 = vweird.f32 %v889_v24  ;;  %v1075_v61 = vadd.f32 %v1074_v41, %v1073_v45 }
 0x277   :  { %1230 = vst.msk [vmem:[%s2317_s2 + $0x130] sm:$0x3] %vm412_vm5, %v806_v46  ;;  %v1062_v46 = vrot.slane %v1061_v17, 2 }
 0x279   :  { %v1063_v42 = vadd.f32 %v1062_v46, %v1061_v17 }
 0x27b   :  { %v1064_v58 = vrot.slane %v1063_v42, 1 }
 0x27c   :  { %v1336_v28 = vpop.eup %1335 }
 0x27d   :  { %v891_v56 = vmul.f32 %v1336_v28, %v889_v24  ;;  %vm897_vm3 = vweird.f32 %v1336_v28  ;;  %v1076_v24 = vrot.slane %v1075_v61, 1  ;;  %v1065_v48 = vadd.f32 %v1064_v58, %v1063_v42 }
 0x27e   :  { %842 = vrot.lane.b32.xlu1 %v837_v53, %s1386_s22  ;;  %vm898_vm7 = vmor %vm896_vm6, %vm897_vm3 }
 0x27f   :  { %v892_v1 = vmul.f32 %v1336_v28, %v891_v56  ;;  %v1077_v38 = vadd.f32 %v1076_v24, %v1075_v61 }
 0x280   :  { %v726_v14 = vpop.permute.xlu2 %725 }
 0x281   :  { %1219 = vst.msk [vmem:[%s2317_s2 + $0x49] sm:$0xff] %vm433_vm9, %v726_v14  ;;  %v893_v35 = vmul.f32 0.5, %v892_v1 }
 0x283   :  { %v894_v21 = vsub.f32 1.5, %v893_v35 }
 0x285   :  { %v895_v47 = vmul.f32 %v1336_v28, %v894_v21 }
 0x287   :  { %v899_v54 = vsel %vm898_vm7, %v1336_v28, %v895_v47 }
 0x288   :  { %1305 = vpush %v899_v54  ;;  %v744_v6 = vpop.permute.xlu2 %743 }
 0x289   :  { %1307 = vpush %v966_v3 }
 0x28a   :  { %1309 = vpush %v978_v4 }
 0x28b   :  { %1222 = vst.msk [vmem:[%s2317_s2 + $0x111] sm:$0xff] %vm433_vm9, %v744_v6 }
 0x297   :  { %v728_v33 = vpop.permute.xlu1 %727  ;;  %v742_v27 = vpop.permute.xlu0 %741 }
 0x298   :  { %1220 = vst.msk [vmem:[%s2317_s2 + $0x51] sm:$0xff] %vm433_vm9, %v728_v33 }
 0x299   :  { %1221 = vst.msk [vmem:[%s2317_s2 + $0x109] sm:$0xff] %vm433_vm9, %v742_v27 }
 0x2b9   :  { %s1306_s4 = spop %1305 }
 0x2ba   :  { %s901_s7 = smul.f32 %s1306_s4, %s1235_s30  ;;  %s1308_s8 = spop %1307 }
 0x2bb   :  { %s2135_s5 = smul.f32 0.0015432099, %s1308_s8  ;;  %s1310_s9 = spop %1309 }
 0x2bc   :  { %s902_s11 = smul.f32 %s901_s7, %s2076_s6  ;;  %v913_v7 = vstv %s901_s7 }
 0x2bd   :  { %s982_s12 = smul.f32 %s2135_s5, %s2135_s5  ;;  %v915_v20 = vmul.f32 %v913_v7, %v1694_v25  ;;  %v914_v11 = vmul.f32 %v913_v7, %v1687_v62  ;;  %v931_v30 = vmul.f32 %v913_v7, %v1720_v19  ;;  %v932_v8 = vmul.f32 %v913_v7, %v1728_v29 }
 0x2be   :  { %s903_s13 = ssub.f32 %s1236_s3, %s902_s11  ;;  %s981_s14 = smul.f32 0.0015432099, %s1310_s9 }
 0x2c0   :  { %s904_s10 = smax.f32 %s1385_s19, %s903_s13  ;;  %v916_v10 = vstv %s903_s13  ;;  %s983_s15 = ssub.f32 %s981_s14, %s982_s12 }
 0x2c1   :  { %v905_v12 = vstv %s904_s10  ;;  %v918_v63 = vadd.f32 %v916_v10, %v915_v20  ;;  %v917_v51 = vadd.f32 %v916_v10, %v914_v11  ;;  %v933_v2 = vadd.f32 %v931_v30, %v916_v10  ;;  %s1247_s12 = sld [smem:[#allocation5 + $0x28]] }
 0x2c2   :  { %1237 = vst.msk [vmem:[%s2317_s2 + $0x78] sm:$0xff] %vm409_vm4, %v905_v12  ;;  %s984_s17 = smax.f32 %s1385_s19, %s983_s15  ;;  %v934_v18 = vadd.f32 %v932_v8, %v916_v10  ;;  %s1248_s13 = sld [smem:[#allocation5 + $0x29]] }
 0x2c3   :  { %1238 = vst.msk [vmem:[%s2317_s2 + $0x80] sm:$0xff] %vm409_vm4, %v905_v12  ;;  %s987_s20 = sadd.f32 1e-05, %s984_s17  ;;  %v920_v62 = vmax.f32 %v918_v63, 0.0  ;;  %v919_v25 = vmax.f32 %v917_v51, 0.0  ;;  %v935_v19 = vmax.f32 %v933_v2, 0.0 }
 0x2c4   :  { %1239 = vst.msk [vmem:[%s2317_s2 + $0x88] sm:$0x3] %vm412_vm5, %v905_v12  ;;  %v936_v29 = vmax.f32 %v934_v18, 0.0 }
 0x2c5   :  { %1240 = vst.msk [vmem:[%s2317_s2 + $0x138] sm:$0xff] %vm409_vm4, %v905_v12  ;;  %v988_v52 = vstv %s987_s20  ;;  %925 = vrot.lane.b32.xlu2 %v920_v62, %s1386_s22  ;;  %923 = vrot.lane.b32.xlu0 %v919_v25, %s1386_s22 }
 0x2c6   :  { %1241 = vst.msk [vmem:[%s2317_s2 + $0x140] sm:$0xff] %vm409_vm4, %v905_v12  ;;  %1337 = vrsqrt.f32 %v988_v52  ;;  %939 = vrot.lane.b32.xlu1 %v935_v19, %s1386_s22  ;;  %vm995_vm10 = vweird.f32 %v988_v52 }
 0x2c7   :  { %1242 = vst.msk [vmem:[%s2317_s2 + $0x148] sm:$0x3] %vm412_vm5, %v905_v12 }
 0x2cc   :  { %v1338_v50 = vpop.eup %1337 }
 0x2cd   :  { %v990_v39 = vmul.f32 %v1338_v50, %v988_v52  ;;  %941 = vrot.lane.b32.xlu0 %v936_v29, %s1386_s22  ;;  %vm996_vm8 = vweird.f32 %v1338_v50 }
 0x2ce   :  { %vm997_vm11 = vmor %vm995_vm10, %vm996_vm8 }
 0x2cf   :  { %v841_v44 = vpop.permute.xlu2 %840  ;;  %v991_v40 = vmul.f32 %v1338_v50, %v990_v39 }
 0x2d0   :  { %1233 = vst.msk [vmem:[%s2317_s2 + $0x121] sm:$0xff] %vm433_vm9, %v841_v44 }
 0x2d1   :  { %v992_v13 = vmul.f32 0.5, %v991_v40 }
 0x2d3   :  { %v993_v57 = vsub.f32 1.5, %v992_v13 }
 0x2d5   :  { %v994_v60 = vmul.f32 %v1338_v50, %v993_v57 }
 0x2d7   :  { %v998_v0 = vsel %vm997_vm11, %v1338_v50, %v994_v60 }
 0x2d8   :  { %1311 = vpush %v998_v0 }
 0x2d9   :  { %1313 = vpush %v1065_v48 }
 0x2da   :  { %1315 = vpush %v1077_v38 }
 0x2e7   :  { %v827_v43 = vpop.permute.xlu0 %826 }
 0x2e8   :  { %v825_v28 = vpop.permute.xlu1 %824  ;;  %1232 = vst.msk [vmem:[%s2317_s2 + $0x69] sm:$0xff] %vm433_vm9, %v827_v43 }
 0x2e9   :  { %1231 = vst.msk [vmem:[%s2317_s2 + $0x61] sm:$0xff] %vm433_vm9, %v825_v28 }
 0x2f0   :  { %v843_v49 = vpop.permute.xlu1 %842 }
 0x2f1   :  { %1234 = vst.msk [vmem:[%s2317_s2 + $0x129] sm:$0xff] %vm433_vm9, %v843_v49 }
 0x309   :  { %s1312_s14 = spop %1311 }
 0x30a   :  { %s1000_s10 = smul.f32 %s1312_s14, %s1247_s12  ;;  %s1314_s15 = spop %1313 }
 0x30b   :  { %s2194_s6 = smul.f32 0.0015432099, %s1314_s15  ;;  %s1316_s16 = spop %1315 }
 0x30c   :  { %s1001_s17 = smul.f32 %s1000_s10, %s2135_s5  ;;  %v1012_v53 = vstv %s1000_s10 }
 0x30d   :  { %s1081_s18 = smul.f32 %s2194_s6, %s2194_s6  ;;  %v1030_v56 = vmul.f32 %v1012_v53, %v1818_v59  ;;  %v1014_v1 = vmul.f32 %v1012_v53, %v1815_v32  ;;  %v1013_v55 = vmul.f32 %v1012_v53, %v1811_v37  ;;  %v1031_v47 = vmul.f32 %v1012_v53, %v1826_v23 }
 0x30e   :  { %s1002_s0 = ssub.f32 %s1248_s13, %s1001_s17  ;;  %s1080_s20 = smul.f32 0.0015432099, %s1316_s16 }
 0x310   :  { %s1003_s21 = smax.f32 %s1385_s19, %s1002_s0  ;;  %v1015_v14 = vstv %s1002_s0  ;;  %s1082_s1 = ssub.f32 %s1080_s20, %s1081_s18 }
 0x311   :  { %v1004_v22 = vstv %s1003_s21  ;;  %v1032_v35 = vadd.f32 %v1030_v56, %v1015_v14  ;;  %v1017_v21 = vadd.f32 %v1015_v14, %v1014_v1  ;;  %v1016_v16 = vadd.f32 %v1015_v14, %v1013_v55  ;;  %s1259_s18 = sld [smem:[#allocation5 + $0x2e]] }
 0x312   :  { %1249 = vst.msk [vmem:[%s2317_s2 + $0x90] sm:$0xff] %vm409_vm4, %v1004_v22  ;;  %s1083_s24 = smax.f32 %s1385_s19, %s1082_s1  ;;  %v1033_v54 = vadd.f32 %v1031_v47, %v1015_v14  ;;  %s1260_s0 = sld [smem:[#allocation5 + $0x2f]] }
 0x313   :  { %1250 = vst.msk [vmem:[%s2317_s2 + $0x98] sm:$0xff] %vm409_vm4, %v1004_v22  ;;  %s1086_s27 = sadd.f32 1e-05, %s1083_s24  ;;  %v1034_v37 = vmax.f32 %v1032_v35, 0.0  ;;  %v1019_v32 = vmax.f32 %v1017_v21, 0.0  ;;  %v1018_v59 = vmax.f32 %v1016_v16, 0.0 }
 0x314   :  { %1251 = vst.msk [vmem:[%s2317_s2 + $0xa0] sm:$0x3] %vm412_vm5, %v1004_v22  ;;  %v1035_v4 = vmax.f32 %v1033_v54, 0.0 }
 0x315   :  { %1252 = vst.msk [vmem:[%s2317_s2 + $0x150] sm:$0xff] %vm409_vm4, %v1004_v22  ;;  %v1087_v15 = vstv %s1086_s27  ;;  %1038 = vrot.lane.b32.xlu0 %v1034_v37, %s1386_s22  ;;  %1024 = vrot.lane.b32.xlu1 %v1019_v32, %s1386_s22 }
 0x316   :  { %1253 = vst.msk [vmem:[%s2317_s2 + $0x158] sm:$0xff] %vm409_vm4, %v1004_v22  ;;  %1339 = vrsqrt.f32 %v1087_v15  ;;  %1022 = vrot.lane.b32.xlu2 %v1018_v59, %s1386_s22  ;;  %vm1094_vm13 = vweird.f32 %v1087_v15 }
 0x317   :  { %1254 = vst.msk [vmem:[%s2317_s2 + $0x160] sm:$0x3] %vm412_vm5, %v1004_v22 }
 0x31c   :  { %v1340_v3 = vpop.eup %1339 }
 0x31d   :  { %v1089_v6 = vmul.f32 %v1340_v3, %v1087_v15  ;;  %vm1095_vm12 = vweird.f32 %v1340_v3 }
 0x31e   :  { %1040 = vrot.lane.b32.xlu2 %v1035_v4, %s1386_s22  ;;  %vm1096_vm14 = vmor %vm1094_vm13, %vm1095_vm12 }
 0x31f   :  { %v926_v33 = vpop.permute.xlu2 %925  ;;  %v1090_v27 = vmul.f32 %v1340_v3, %v1089_v6 }
 0x320   :  { %1244 = vst.msk [vmem:[%s2317_s2 + $0x81] sm:$0xff] %vm433_vm9, %v926_v33 }
 0x321   :  { %v1091_v7 = vmul.f32 0.5, %v1090_v27 }
 0x323   :  { %v1092_v23 = vsub.f32 1.5, %v1091_v7 }
 0x325   :  { %v1093_v20 = vmul.f32 %v1340_v3, %v1092_v23 }
 0x327   :  { %v1097_v11 = vsel %vm1096_vm14, %v1340_v3, %v1093_v20 }
 0x328   :  { %1317 = vpush %v1097_v11 }
 0x337   :  { %v924_v30 = vpop.permute.xlu0 %923 }
 0x338   :  { %v940_v10 = vpop.permute.xlu1 %939  ;;  %1243 = vst.msk [vmem:[%s2317_s2 + $0x79] sm:$0xff] %vm433_vm9, %v924_v30 }
 0x339   :  { %1245 = vst.msk [vmem:[%s2317_s2 + $0x139] sm:$0xff] %vm433_vm9, %v940_v10 }
 0x33f   :  { %v942_v12 = vpop.permute.xlu0 %941 }
 0x340   :  { %1246 = vst.msk [vmem:[%s2317_s2 + $0x141] sm:$0xff] %vm433_vm9, %v942_v12 }
 0x359   :  { %s1318_s20 = spop %1317 }
 0x35a   :  { %s1099_s21 = smul.f32 %s1318_s20, %s1259_s18 }
 0x35c   :  { %s1100_s1 = smul.f32 %s1099_s21, %s2194_s6  ;;  %v1111_v63 = vstv %s1099_s21 }
 0x35d   :  { %v1129_v51 = vmul.f32 %v1111_v63, %v1789_v26  ;;  %v1113_v2 = vmul.f32 %v1111_v63, %v1776_v36  ;;  %v1112_v5 = vmul.f32 %v1111_v63, %v1773_v34  ;;  %v1130_v8 = vmul.f32 %v1111_v63, %v1791_v9 }
 0x35e   :  { %s1101_s5 = ssub.f32 %s1260_s0, %s1100_s1 }
 0x360   :  { %s1102_s23 = smax.f32 %s1385_s19, %s1101_s5  ;;  %v1114_v62 = vstv %s1101_s5 }
 0x361   :  { %v1103_v25 = vstv %s1102_s23  ;;  %v1131_v19 = vadd.f32 %v1129_v51, %v1114_v62  ;;  %v1116_v31 = vadd.f32 %v1114_v62, %v1113_v2  ;;  %v1115_v52 = vadd.f32 %v1114_v62, %v1112_v5 }
 0x362   :  { %1261 = vst.msk [vmem:[%s2317_s2 + $0xa8] sm:$0xff] %vm409_vm4, %v1103_v25  ;;  %v1132_v17 = vadd.f32 %v1130_v8, %v1114_v62 }
 0x363   :  { %1262 = vst.msk [vmem:[%s2317_s2 + $0xb0] sm:$0xff] %vm409_vm4, %v1103_v25  ;;  %v1133_v36 = vmax.f32 %v1131_v19, 0.0  ;;  %v1118_v26 = vmax.f32 %v1116_v31, 0.0  ;;  %v1117_v34 = vmax.f32 %v1115_v52, 0.0 }
 0x364   :  { %1263 = vst.msk [vmem:[%s2317_s2 + $0xb8] sm:$0x3] %vm412_vm5, %v1103_v25  ;;  %v1134_v18 = vmax.f32 %v1132_v17, 0.0 }
 0x365   :  { %1264 = vst.msk [vmem:[%s2317_s2 + $0x168] sm:$0xff] %vm409_vm4, %v1103_v25  ;;  %1137 = vrot.lane.b32.xlu2 %v1133_v36, %s1386_s22  ;;  %1123 = vrot.lane.b32.xlu0 %v1118_v26, %s1386_s22 }
 0x366   :  { %1265 = vst.msk [vmem:[%s2317_s2 + $0x170] sm:$0xff] %vm409_vm4, %v1103_v25  ;;  %1121 = vrot.lane.b32.xlu1 %v1117_v34, %s1386_s22 }
 0x367   :  { %1266 = vst.msk [vmem:[%s2317_s2 + $0x178] sm:$0x3] %vm412_vm5, %v1103_v25 }
 0x36e   :  { %1139 = vrot.lane.b32.xlu1 %v1134_v18, %s1386_s22 }
 0x370   :  { %v1023_v45 = vpop.permute.xlu2 %1022 }
 0x371   :  { %1255 = vst.msk [vmem:[%s2317_s2 + $0x91] sm:$0xff] %vm433_vm9, %v1023_v45 }
 0x378   :  { %v1041_v46 = vpop.permute.xlu2 %1040 }
 0x379   :  { %1258 = vst.msk [vmem:[%s2317_s2 + $0x159] sm:$0xff] %vm433_vm9, %v1041_v46 }
 0x387   :  { %v1025_v9 = vpop.permute.xlu1 %1024  ;;  %v1039_v29 = vpop.permute.xlu0 %1038 }
 0x388   :  { %1256 = vst.msk [vmem:[%s2317_s2 + $0x99] sm:$0xff] %vm433_vm9, %v1025_v9 }
 0x389   :  { %1257 = vst.msk [vmem:[%s2317_s2 + $0x151] sm:$0xff] %vm433_vm9, %v1039_v29 }
 0x3bf   :  { %v1138_v50 = vpop.permute.xlu2 %1137 }
 0x3c0   :  { %1269 = vst.msk [vmem:[%s2317_s2 + $0x169] sm:$0xff] %vm433_vm9, %v1138_v50 }
 0x3d7   :  { %v1124_v41 = vpop.permute.xlu0 %1123 }
 0x3d8   :  { %v1122_v39 = vpop.permute.xlu1 %1121  ;;  %1268 = vst.msk [vmem:[%s2317_s2 + $0xb1] sm:$0xff] %vm433_vm9, %v1124_v41 }
 0x3d9   :  { %1267 = vst.msk [vmem:[%s2317_s2 + $0xa9] sm:$0xff] %vm433_vm9, %v1122_v39 }
 0x3e0   :  { %v1140_v44 = vpop.permute.xlu1 %1139 }
 0x3e1   :  { %1270 = vst.msk [vmem:[%s2317_s2 + $0x171] sm:$0xff] %vm433_vm9, %v1140_v44 }
 0x3e2   :  { %1150 = vsyncpa [#allocation3], 1 }
 0x3e3   :  { %1151 = vsyncpa [#allocation4], 1 }

</bundles_post_ra>
